<compile_context>
chip_gen: v7x
topology: tpu7x:2x2x1
jax: 0.10.0
libtpu: 0.0.40
codegen_flags: <defaults>
</compile_context>

<pallas_src>
import functools

import jax
import jax.numpy as jnp
from jax.experimental import pallas as pl
from jax.experimental.pallas import tpu as pltpu

K = 7      # conv kernel size
PAD = 3    # reflection pad


def _round_up(x, m):
    return (x + m - 1) // m * m


def outconv_kernel(x_ref, w_ref, b_ref, o_ref, *, Wp: int, Cin2: int, mxu_dtype):
    # x_ref: (G, Cin2, Lp)        G image-pairs; each pair's 2*Cin channels on
    #                             sublanes, padded spatial flattened onto lanes.
    # w_ref: (K, Cout2, K*Cin2)   per-ky strip weights (pair-block-diagonal),
    #                             resident across grid steps, already mxu_dtype.
    # b_ref: (Cout2, 1)           bias replicated for both pair slots, f32.
    # o_ref: (G, Cout2, Qp)       lane-dense "wide" output, Qp % 128 == 0.
    G, Cout2, Qp = o_ref.shape

    # Resident weights: load the 7 ky-strips once per grid step (hoisted out of
    # the per-pair loop).
    w_strips = [w_ref[ky] for ky in range(K)]                 # each (Cout2, K*Cin2)

    for g in range(G):                                        # static unroll over pairs
        acc = jnp.zeros((Cout2, Qp), jnp.float32)
        # Per-ky strip matmuls (7 matmuls of contraction K*Cin2) instead of one
        # huge materialized im2col patch: keeps the live strip small (no
        # regalloc spill of a ~K*K*Cin*Qp f32 buffer) while still avoiding 49
        # tiny contraction-Cin matmuls.
        for ky in range(K):
            taps = []
            for kx in range(K):
                s = ky * Wp + kx                              # constant lane shift
                taps.append(x_ref[g, :, s:s + Qp])            # (Cin2, Qp)
            strip = jnp.concatenate(taps, axis=0).astype(mxu_dtype)   # (K*Cin2, Qp)
            acc = acc + jnp.dot(w_strips[ky], strip,
                                preferred_element_type=jnp.float32)
        acc = acc + b_ref[...]                                # (Cout2,1) broadcasts over lanes
        o_ref[g, :, :] = jnp.tanh(acc).astype(o_ref.dtype)


def outconv_forward(x_nchw, weight, bias, *, mxu_dtype=jnp.bfloat16,
                    pairs_per_block=None):
    """x_nchw: (N, Cin, H, W); weight: (Cout, Cin, K, K); bias: (Cout,)."""
    N, Cin, H, W = x_nchw.shape
    Cout = weight.shape[0]
    assert H >= PAD + 1 and W >= PAD + 1, "reflection pad requires H, W >= 4"
    Hp, Wp = H + 2 * PAD, W + 2 * PAD
    Cin2, Cout2 = 2 * Cin, 2 * Cout

    # Reflection pad (plain-JAX glue, matches nn.ReflectionPad2d(3)).
    xp = jnp.pad(x_nchw, ((0, 0), (0, 0), (PAD, PAD), (PAD, PAD)), mode="reflect")

    # ---- pack two images per "pair" onto the otherwise idle sublanes -------
    N2 = _round_up(N, 2)
    NP = N2 // 2
    xp = jnp.pad(xp, ((0, N2 - N), (0, 0), (0, 0), (0, 0)))
    # pair p packs images 2p (rows 0..Cin-1) and 2p+1 (rows Cin..2Cin-1)
    x_pairs = xp.reshape(NP, Cin2, Hp * Wp)

    Q = H * Wp                                 # "wide" output columns per image
    Qp = _round_up(Q, 128)                     # lane-dense output width
    max_shift = (K - 1) * Wp + (K - 1)
    Lp = _round_up(max_shift + Qp, 128)        # always >= Hp*Wp; shifted slices in bounds
    x_pairs = jnp.pad(x_pairs, ((0, 0), (0, 0), (0, Lp - Hp * Wp)))

    # ---- group several pairs per grid step ---------------------------------
    if pairs_per_block is None:
        # Amortize per-step overhead, but keep >=2 grid steps when possible so
        # both v7x TensorCores get work (no-op on single-TC v5e/v6e).
        pairs_per_block = max(1, min(4, (NP + 1) // 2))
    G = pairs_per_block
    NPb = _round_up(NP, G)
    x_pairs = jnp.pad(x_pairs, ((0, NPb - NP), (0, 0), (0, 0)))

    # ---- pair-block-diagonal, tap-major weights, split into ky strips ------
    # contraction index = ((ky*K + kx)*2 + slot)*Cin + c ; output row = slot*Cout + o
    w_t = jnp.transpose(weight, (2, 3, 1, 0))                  # (K, K, Cin, Cout)
    wz = jnp.zeros((K, K, 2, Cin, 2, Cout), weight.dtype)
    wz = wz.at[:, :, 0, :, 0, :].set(w_t)                      # image-0 block
    wz = wz.at[:, :, 1, :, 1, :].set(w_t)                      # image-1 block
    w_pack = wz.reshape(K * K * Cin2, Cout2).T                 # (Cout2, K*K*Cin2)
    w_strips = w_pack.reshape(Cout2, K, K * Cin2).transpose(1, 0, 2)  # (K, Cout2, K*Cin2)
    w_strips = w_strips.astype(mxu_dtype)                      # MXU operands only
    b2 = jnp.concatenate([bias, bias]).reshape(Cout2, 1).astype(jnp.float32)

    kernel = functools.partial(outconv_kernel, Wp=Wp, Cin2=Cin2, mxu_dtype=mxu_dtype)
    out_wide = pl.pallas_call(
        kernel,
        out_shape=jax.ShapeDtypeStruct((NPb, Cout2, Qp), x_nchw.dtype),
        grid=(NPb // G,),
        in_specs=[
            pl.BlockSpec((G, Cin2, Lp), lambda i: (i, 0, 0)),
            pl.BlockSpec((K, Cout2, K * Cin2), lambda i: (0, 0, 0)),  # resident
            pl.BlockSpec((Cout2, 1), lambda i: (0, 0)),               # resident
        ],
        out_specs=pl.BlockSpec((G, Cout2, Qp), lambda i: (i, 0, 0)),
        compiler_params=pltpu.CompilerParams(
            dimension_semantics=("parallel",),
            # Generous explicit budget; per-step usage here is well under 1 MiB.
            # When strip-tiling large images, re-derive this for v7x's 64 MiB.
            vmem_limit_bytes=32 * 1024 * 1024,
        ),
    )(x_pairs, w_strips, b2)

    # Unpack pairs, drop zero-padded images and junk wide columns -> NCHW.
    # (Wrapper-side un-widen: negligible for the target shapes; for very small
    #  W with tight latency budgets, write dense W-wide rows from the kernel.)
    out = out_wide[:NP].reshape(NP, 2, Cout, Qp).reshape(2 * NP, Cout, Qp)[:N]
    out = out[:, :, :Q].reshape(N, Cout, H, Wp)[:, :, :, :W]
    return out


def _reference(x_nchw, weight, bias):
    """Pure-JAX reference: reflect-pad + conv (NCHW) + tanh."""
    xp = jnp.pad(x_nchw, ((0, 0), (0, 0), (PAD, PAD), (PAD, PAD)), mode="reflect")
    y = jax.lax.conv_general_dilated(
        xp, weight, window_strides=(1, 1), padding="VALID",
        dimension_numbers=("NCHW", "OIHW", "NCHW"))
    return jnp.tanh(y + bias[None, :, None, None])


if __name__ == "__main__":
    N, Cin, Cout, H, W = 2, 4, 3, 16, 16

    key = jax.random.PRNGKey(0)
    kx, kw, kb = jax.random.split(key, 3)

    x = jax.random.normal(kx, (N, Cin, H, W), dtype=jnp.float32)

    # Deterministic init mimicking PyTorch Conv2d default: U(-b, b), b=1/sqrt(fan_in)
    fan_in = Cin * K * K
    bound = 1.0 / float(fan_in) ** 0.5
    weight = jax.random.uniform(kw, (Cout, Cin, K, K), jnp.float32,
                                minval=-bound, maxval=bound)
    bias = jax.random.uniform(kb, (Cout,), jnp.float32,
                              minval=-bound, maxval=bound)

    ref = jax.block_until_ready(_reference(x, weight, bias))

    # Exact path (f32 MXU operands): validates the packing / tap / layout logic.
    out_f32 = jax.block_until_ready(
        outconv_forward(x, weight, bias, mxu_dtype=jnp.float32))
    assert out_f32.shape == (N, Cout, H, W)
    assert jnp.allclose(out_f32, ref, atol=1e-4, rtol=1e-4)

    # Default fast path (bf16 MXU operands, f32 accumulation / bias / tanh).
    out = jax.block_until_ready(outconv_forward(x, weight, bias))
    assert out.shape == (N, Cout, H, W)
    assert jnp.allclose(out, ref, atol=2e-2, rtol=2e-2)

    print("KERNEL_OK")
</pallas_src>

<mosaic_0001>
module attributes {stable_mosaic.version = 11 : i64} {
  func.func @outconv_kernel(%arg0: i32, %arg1: memref<1x8x640xf32, #tpu.memory_space<vmem>>, %arg2: memref<7x6x56xf32, #tpu.memory_space<vmem>>, %arg3: memref<6x1xf32, #tpu.memory_space<vmem>>, %arg4: memref<1x6x384xf32, #tpu.memory_space<vmem>>) attributes {dimension_semantics = [#tpu.dimension_semantics<parallel>], iteration_bounds = array<i64: 1>, scalar_prefetch = 0 : i64, scratch_operands = 0 : i64, tpu.core_type = #tpu.core_type<tc>, window_params = [{transform_indices = @transform_0, window_bounds = array<i64: 1, 8, 640>}, {pipeline_mode = #tpu.pipeline_mode<synchronous>, transform_indices = @transform_1, window_bounds = array<i64: 7, 6, 56>}, {pipeline_mode = #tpu.pipeline_mode<synchronous>, transform_indices = @transform_2, window_bounds = array<i64: 6, 1>}, {transform_indices = @transform_3, window_bounds = array<i64: 1, 6, 384>}]} {
    %c0 = arith.constant 0 : index
    %c0_0 = arith.constant 0 : index
    %c0_1 = arith.constant 0 : index
    %0 = vector.load %arg2[%c0, %c0_0, %c0_1] : memref<7x6x56xf32, #tpu.memory_space<vmem>>, vector<1x6x56xf32>
    %1 = vector.shape_cast %0 : vector<1x6x56xf32> to vector<6x56xf32>
    %c1 = arith.constant 1 : index
    %c0_2 = arith.constant 0 : index
    %c0_3 = arith.constant 0 : index
    %2 = vector.load %arg2[%c1, %c0_2, %c0_3] : memref<7x6x56xf32, #tpu.memory_space<vmem>>, vector<1x6x56xf32>
    %3 = vector.shape_cast %2 : vector<1x6x56xf32> to vector<6x56xf32>
    %c2 = arith.constant 2 : index
    %c0_4 = arith.constant 0 : index
    %c0_5 = arith.constant 0 : index
    %4 = vector.load %arg2[%c2, %c0_4, %c0_5] : memref<7x6x56xf32, #tpu.memory_space<vmem>>, vector<1x6x56xf32>
    %5 = vector.shape_cast %4 : vector<1x6x56xf32> to vector<6x56xf32>
    %c3 = arith.constant 3 : index
    %c0_6 = arith.constant 0 : index
    %c0_7 = arith.constant 0 : index
    %6 = vector.load %arg2[%c3, %c0_6, %c0_7] : memref<7x6x56xf32, #tpu.memory_space<vmem>>, vector<1x6x56xf32>
    %7 = vector.shape_cast %6 : vector<1x6x56xf32> to vector<6x56xf32>
    %c4 = arith.constant 4 : index
    %c0_8 = arith.constant 0 : index
    %c0_9 = arith.constant 0 : index
    %8 = vector.load %arg2[%c4, %c0_8, %c0_9] : memref<7x6x56xf32, #tpu.memory_space<vmem>>, vector<1x6x56xf32>
    %9 = vector.shape_cast %8 : vector<1x6x56xf32> to vector<6x56xf32>
    %c5 = arith.constant 5 : index
    %c0_10 = arith.constant 0 : index
    %c0_11 = arith.constant 0 : index
    %10 = vector.load %arg2[%c5, %c0_10, %c0_11] : memref<7x6x56xf32, #tpu.memory_space<vmem>>, vector<1x6x56xf32>
    %11 = vector.shape_cast %10 : vector<1x6x56xf32> to vector<6x56xf32>
    %c6 = arith.constant 6 : index
    %c0_12 = arith.constant 0 : index
    %c0_13 = arith.constant 0 : index
    %12 = vector.load %arg2[%c6, %c0_12, %c0_13] : memref<7x6x56xf32, #tpu.memory_space<vmem>>, vector<1x6x56xf32>
    %13 = vector.shape_cast %12 : vector<1x6x56xf32> to vector<6x56xf32>
    %cst = arith.constant 0.000000e+00 : f32
    %14 = vector.broadcast %cst : f32 to vector<6x384xf32>
    %c0_14 = arith.constant 0 : index
    %c0_15 = arith.constant 0 : index
    %c0_16 = arith.constant 0 : index
    %15 = vector.load %arg1[%c0_14, %c0_15, %c0_16] : memref<1x8x640xf32, #tpu.memory_space<vmem>>, vector<1x8x384xf32>
    %16 = vector.shape_cast %15 : vector<1x8x384xf32> to vector<8x384xf32>
    %c0_17 = arith.constant 0 : index
    %c0_18 = arith.constant 0 : index
    %c1_19 = arith.constant 1 : index
    %17 = vector.load %arg1[%c0_17, %c0_18, %c1_19] : memref<1x8x640xf32, #tpu.memory_space<vmem>>, vector<1x8x384xf32>
    %18 = vector.shape_cast %17 : vector<1x8x384xf32> to vector<8x384xf32>
    %c0_20 = arith.constant 0 : index
    %c0_21 = arith.constant 0 : index
    %c2_22 = arith.constant 2 : index
    %19 = vector.load %arg1[%c0_20, %c0_21, %c2_22] : memref<1x8x640xf32, #tpu.memory_space<vmem>>, vector<1x8x384xf32>
    %20 = vector.shape_cast %19 : vector<1x8x384xf32> to vector<8x384xf32>
    %c0_23 = arith.constant 0 : index
    %c0_24 = arith.constant 0 : index
    %c3_25 = arith.constant 3 : index
    %21 = vector.load %arg1[%c0_23, %c0_24, %c3_25] : memref<1x8x640xf32, #tpu.memory_space<vmem>>, vector<1x8x384xf32>
    %22 = vector.shape_cast %21 : vector<1x8x384xf32> to vector<8x384xf32>
    %c0_26 = arith.constant 0 : index
    %c0_27 = arith.constant 0 : index
    %c4_28 = arith.constant 4 : index
    %23 = vector.load %arg1[%c0_26, %c0_27, %c4_28] : memref<1x8x640xf32, #tpu.memory_space<vmem>>, vector<1x8x384xf32>
    %24 = vector.shape_cast %23 : vector<1x8x384xf32> to vector<8x384xf32>
    %c0_29 = arith.constant 0 : index
    %c0_30 = arith.constant 0 : index
    %c5_31 = arith.constant 5 : index
    %25 = vector.load %arg1[%c0_29, %c0_30, %c5_31] : memref<1x8x640xf32, #tpu.memory_space<vmem>>, vector<1x8x384xf32>
    %26 = vector.shape_cast %25 : vector<1x8x384xf32> to vector<8x384xf32>
    %c0_32 = arith.constant 0 : index
    %c0_33 = arith.constant 0 : index
    %c6_34 = arith.constant 6 : index
    %27 = vector.load %arg1[%c0_32, %c0_33, %c6_34] : memref<1x8x640xf32, #tpu.memory_space<vmem>>, vector<1x8x384xf32>
    %28 = vector.shape_cast %27 : vector<1x8x384xf32> to vector<8x384xf32>
    %29 = tpu.concatenate %16, %18, %20, %22, %24, %26, %28 in 0 : vector<8x384xf32>, vector<8x384xf32>, vector<8x384xf32>, vector<8x384xf32>, vector<8x384xf32>, vector<8x384xf32>, vector<8x384xf32> -> vector<56x384xf32>
    %cst_35 = arith.constant dense<0.000000e+00> : vector<6x384xf32>
    %30 = tpu.matmul %1, %29, %cst_35 {dimension_numbers = #tpu.dot_dimension_numbers<[1], [0], [0], [1], [0, 0, 1, 1], [], []>} : vector<6x56xf32>, vector<56x384xf32>, vector<6x384xf32> -> vector<6x384xf32>
    %31 = arith.addf %14, %30 : vector<6x384xf32>
    %c0_36 = arith.constant 0 : index
    %c0_37 = arith.constant 0 : index
    %c22 = arith.constant 22 : index
    %32 = vector.load %arg1[%c0_36, %c0_37, %c22] : memref<1x8x640xf32, #tpu.memory_space<vmem>>, vector<1x8x384xf32>
    %33 = vector.shape_cast %32 : vector<1x8x384xf32> to vector<8x384xf32>
    %c0_38 = arith.constant 0 : index
    %c0_39 = arith.constant 0 : index
    %c23 = arith.constant 23 : index
    %34 = vector.load %arg1[%c0_38, %c0_39, %c23] : memref<1x8x640xf32, #tpu.memory_space<vmem>>, vector<1x8x384xf32>
    %35 = vector.shape_cast %34 : vector<1x8x384xf32> to vector<8x384xf32>
    %c0_40 = arith.constant 0 : index
    %c0_41 = arith.constant 0 : index
    %c24 = arith.constant 24 : index
    %36 = vector.load %arg1[%c0_40, %c0_41, %c24] : memref<1x8x640xf32, #tpu.memory_space<vmem>>, vector<1x8x384xf32>
    %37 = vector.shape_cast %36 : vector<1x8x384xf32> to vector<8x384xf32>
    %c0_42 = arith.constant 0 : index
    %c0_43 = arith.constant 0 : index
    %c25 = arith.constant 25 : index
    %38 = vector.load %arg1[%c0_42, %c0_43, %c25] : memref<1x8x640xf32, #tpu.memory_space<vmem>>, vector<1x8x384xf32>
    %39 = vector.shape_cast %38 : vector<1x8x384xf32> to vector<8x384xf32>
    %c0_44 = arith.constant 0 : index
    %c0_45 = arith.constant 0 : index
    %c26 = arith.constant 26 : index
    %40 = vector.load %arg1[%c0_44, %c0_45, %c26] : memref<1x8x640xf32, #tpu.memory_space<vmem>>, vector<1x8x384xf32>
    %41 = vector.shape_cast %40 : vector<1x8x384xf32> to vector<8x384xf32>
    %c0_46 = arith.constant 0 : index
    %c0_47 = arith.constant 0 : index
    %c27 = arith.constant 27 : index
    %42 = vector.load %arg1[%c0_46, %c0_47, %c27] : memref<1x8x640xf32, #tpu.memory_space<vmem>>, vector<1x8x384xf32>
    %43 = vector.shape_cast %42 : vector<1x8x384xf32> to vector<8x384xf32>
    %c0_48 = arith.constant 0 : index
    %c0_49 = arith.constant 0 : index
    %c28 = arith.constant 28 : index
    %44 = vector.load %arg1[%c0_48, %c0_49, %c28] : memref<1x8x640xf32, #tpu.memory_space<vmem>>, vector<1x8x384xf32>
    %45 = vector.shape_cast %44 : vector<1x8x384xf32> to vector<8x384xf32>
    %46 = tpu.concatenate %33, %35, %37, %39, %41, %43, %45 in 0 : vector<8x384xf32>, vector<8x384xf32>, vector<8x384xf32>, vector<8x384xf32>, vector<8x384xf32>, vector<8x384xf32>, vector<8x384xf32> -> vector<56x384xf32>
    %cst_50 = arith.constant dense<0.000000e+00> : vector<6x384xf32>
    %47 = tpu.matmul %3, %46, %cst_50 {dimension_numbers = #tpu.dot_dimension_numbers<[1], [0], [0], [1], [0, 0, 1, 1], [], []>} : vector<6x56xf32>, vector<56x384xf32>, vector<6x384xf32> -> vector<6x384xf32>
    %48 = arith.addf %31, %47 : vector<6x384xf32>
    %c0_51 = arith.constant 0 : index
    %c0_52 = arith.constant 0 : index
    %c44 = arith.constant 44 : index
    %49 = vector.load %arg1[%c0_51, %c0_52, %c44] : memref<1x8x640xf32, #tpu.memory_space<vmem>>, vector<1x8x384xf32>
    %50 = vector.shape_cast %49 : vector<1x8x384xf32> to vector<8x384xf32>
    %c0_53 = arith.constant 0 : index
    %c0_54 = arith.constant 0 : index
    %c45 = arith.constant 45 : index
    %51 = vector.load %arg1[%c0_53, %c0_54, %c45] : memref<1x8x640xf32, #tpu.memory_space<vmem>>, vector<1x8x384xf32>
    %52 = vector.shape_cast %51 : vector<1x8x384xf32> to vector<8x384xf32>
    %c0_55 = arith.constant 0 : index
    %c0_56 = arith.constant 0 : index
    %c46 = arith.constant 46 : index
    %53 = vector.load %arg1[%c0_55, %c0_56, %c46] : memref<1x8x640xf32, #tpu.memory_space<vmem>>, vector<1x8x384xf32>
    %54 = vector.shape_cast %53 : vector<1x8x384xf32> to vector<8x384xf32>
    %c0_57 = arith.constant 0 : index
    %c0_58 = arith.constant 0 : index
    %c47 = arith.constant 47 : index
    %55 = vector.load %arg1[%c0_57, %c0_58, %c47] : memref<1x8x640xf32, #tpu.memory_space<vmem>>, vector<1x8x384xf32>
    %56 = vector.shape_cast %55 : vector<1x8x384xf32> to vector<8x384xf32>
    %c0_59 = arith.constant 0 : index
    %c0_60 = arith.constant 0 : index
    %c48 = arith.constant 48 : index
    %57 = vector.load %arg1[%c0_59, %c0_60, %c48] : memref<1x8x640xf32, #tpu.memory_space<vmem>>, vector<1x8x384xf32>
    %58 = vector.shape_cast %57 : vector<1x8x384xf32> to vector<8x384xf32>
    %c0_61 = arith.constant 0 : index
    %c0_62 = arith.constant 0 : index
    %c49 = arith.constant 49 : index
    %59 = vector.load %arg1[%c0_61, %c0_62, %c49] : memref<1x8x640xf32, #tpu.memory_space<vmem>>, vector<1x8x384xf32>
    %60 = vector.shape_cast %59 : vector<1x8x384xf32> to vector<8x384xf32>
    %c0_63 = arith.constant 0 : index
    %c0_64 = arith.constant 0 : index
    %c50 = arith.constant 50 : index
    %61 = vector.load %arg1[%c0_63, %c0_64, %c50] : memref<1x8x640xf32, #tpu.memory_space<vmem>>, vector<1x8x384xf32>
    %62 = vector.shape_cast %61 : vector<1x8x384xf32> to vector<8x384xf32>
    %63 = tpu.concatenate %50, %52, %54, %56, %58, %60, %62 in 0 : vector<8x384xf32>, vector<8x384xf32>, vector<8x384xf32>, vector<8x384xf32>, vector<8x384xf32>, vector<8x384xf32>, vector<8x384xf32> -> vector<56x384xf32>
    %cst_65 = arith.constant dense<0.000000e+00> : vector<6x384xf32>
    %64 = tpu.matmul %5, %63, %cst_65 {dimension_numbers = #tpu.dot_dimension_numbers<[1], [0], [0], [1], [0, 0, 1, 1], [], []>} : vector<6x56xf32>, vector<56x384xf32>, vector<6x384xf32> -> vector<6x384xf32>
    %65 = arith.addf %48, %64 : vector<6x384xf32>
    %c0_66 = arith.constant 0 : index
    %c0_67 = arith.constant 0 : index
    %c66 = arith.constant 66 : index
    %66 = vector.load %arg1[%c0_66, %c0_67, %c66] : memref<1x8x640xf32, #tpu.memory_space<vmem>>, vector<1x8x384xf32>
    %67 = vector.shape_cast %66 : vector<1x8x384xf32> to vector<8x384xf32>
    %c0_68 = arith.constant 0 : index
    %c0_69 = arith.constant 0 : index
    %c67 = arith.constant 67 : index
    %68 = vector.load %arg1[%c0_68, %c0_69, %c67] : memref<1x8x640xf32, #tpu.memory_space<vmem>>, vector<1x8x384xf32>
    %69 = vector.shape_cast %68 : vector<1x8x384xf32> to vector<8x384xf32>
    %c0_70 = arith.constant 0 : index
    %c0_71 = arith.constant 0 : index
    %c68 = arith.constant 68 : index
    %70 = vector.load %arg1[%c0_70, %c0_71, %c68] : memref<1x8x640xf32, #tpu.memory_space<vmem>>, vector<1x8x384xf32>
    %71 = vector.shape_cast %70 : vector<1x8x384xf32> to vector<8x384xf32>
    %c0_72 = arith.constant 0 : index
    %c0_73 = arith.constant 0 : index
    %c69 = arith.constant 69 : index
    %72 = vector.load %arg1[%c0_72, %c0_73, %c69] : memref<1x8x640xf32, #tpu.memory_space<vmem>>, vector<1x8x384xf32>
    %73 = vector.shape_cast %72 : vector<1x8x384xf32> to vector<8x384xf32>
    %c0_74 = arith.constant 0 : index
    %c0_75 = arith.constant 0 : index
    %c70 = arith.constant 70 : index
    %74 = vector.load %arg1[%c0_74, %c0_75, %c70] : memref<1x8x640xf32, #tpu.memory_space<vmem>>, vector<1x8x384xf32>
    %75 = vector.shape_cast %74 : vector<1x8x384xf32> to vector<8x384xf32>
    %c0_76 = arith.constant 0 : index
    %c0_77 = arith.constant 0 : index
    %c71 = arith.constant 71 : index
    %76 = vector.load %arg1[%c0_76, %c0_77, %c71] : memref<1x8x640xf32, #tpu.memory_space<vmem>>, vector<1x8x384xf32>
    %77 = vector.shape_cast %76 : vector<1x8x384xf32> to vector<8x384xf32>
    %c0_78 = arith.constant 0 : index
    %c0_79 = arith.constant 0 : index
    %c72 = arith.constant 72 : index
    %78 = vector.load %arg1[%c0_78, %c0_79, %c72] : memref<1x8x640xf32, #tpu.memory_space<vmem>>, vector<1x8x384xf32>
    %79 = vector.shape_cast %78 : vector<1x8x384xf32> to vector<8x384xf32>
    %80 = tpu.concatenate %67, %69, %71, %73, %75, %77, %79 in 0 : vector<8x384xf32>, vector<8x384xf32>, vector<8x384xf32>, vector<8x384xf32>, vector<8x384xf32>, vector<8x384xf32>, vector<8x384xf32> -> vector<56x384xf32>
    %cst_80 = arith.constant dense<0.000000e+00> : vector<6x384xf32>
    %81 = tpu.matmul %7, %80, %cst_80 {dimension_numbers = #tpu.dot_dimension_numbers<[1], [0], [0], [1], [0, 0, 1, 1], [], []>} : vector<6x56xf32>, vector<56x384xf32>, vector<6x384xf32> -> vector<6x384xf32>
    %82 = arith.addf %65, %81 : vector<6x384xf32>
    %c0_81 = arith.constant 0 : index
    %c0_82 = arith.constant 0 : index
    %c88 = arith.constant 88 : index
    %83 = vector.load %arg1[%c0_81, %c0_82, %c88] : memref<1x8x640xf32, #tpu.memory_space<vmem>>, vector<1x8x384xf32>
    %84 = vector.shape_cast %83 : vector<1x8x384xf32> to vector<8x384xf32>
    %c0_83 = arith.constant 0 : index
    %c0_84 = arith.constant 0 : index
    %c89 = arith.constant 89 : index
    %85 = vector.load %arg1[%c0_83, %c0_84, %c89] : memref<1x8x640xf32, #tpu.memory_space<vmem>>, vector<1x8x384xf32>
    %86 = vector.shape_cast %85 : vector<1x8x384xf32> to vector<8x384xf32>
    %c0_85 = arith.constant 0 : index
    %c0_86 = arith.constant 0 : index
    %c90 = arith.constant 90 : index
    %87 = vector.load %arg1[%c0_85, %c0_86, %c90] : memref<1x8x640xf32, #tpu.memory_space<vmem>>, vector<1x8x384xf32>
    %88 = vector.shape_cast %87 : vector<1x8x384xf32> to vector<8x384xf32>
    %c0_87 = arith.constant 0 : index
    %c0_88 = arith.constant 0 : index
    %c91 = arith.constant 91 : index
    %89 = vector.load %arg1[%c0_87, %c0_88, %c91] : memref<1x8x640xf32, #tpu.memory_space<vmem>>, vector<1x8x384xf32>
    %90 = vector.shape_cast %89 : vector<1x8x384xf32> to vector<8x384xf32>
    %c0_89 = arith.constant 0 : index
    %c0_90 = arith.constant 0 : index
    %c92 = arith.constant 92 : index
    %91 = vector.load %arg1[%c0_89, %c0_90, %c92] : memref<1x8x640xf32, #tpu.memory_space<vmem>>, vector<1x8x384xf32>
    %92 = vector.shape_cast %91 : vector<1x8x384xf32> to vector<8x384xf32>
    %c0_91 = arith.constant 0 : index
    %c0_92 = arith.constant 0 : index
    %c93 = arith.constant 93 : index
    %93 = vector.load %arg1[%c0_91, %c0_92, %c93] : memref<1x8x640xf32, #tpu.memory_space<vmem>>, vector<1x8x384xf32>
    %94 = vector.shape_cast %93 : vector<1x8x384xf32> to vector<8x384xf32>
    %c0_93 = arith.constant 0 : index
    %c0_94 = arith.constant 0 : index
    %c94 = arith.constant 94 : index
    %95 = vector.load %arg1[%c0_93, %c0_94, %c94] : memref<1x8x640xf32, #tpu.memory_space<vmem>>, vector<1x8x384xf32>
    %96 = vector.shape_cast %95 : vector<1x8x384xf32> to vector<8x384xf32>
    %97 = tpu.concatenate %84, %86, %88, %90, %92, %94, %96 in 0 : vector<8x384xf32>, vector<8x384xf32>, vector<8x384xf32>, vector<8x384xf32>, vector<8x384xf32>, vector<8x384xf32>, vector<8x384xf32> -> vector<56x384xf32>
    %cst_95 = arith.constant dense<0.000000e+00> : vector<6x384xf32>
    %98 = tpu.matmul %9, %97, %cst_95 {dimension_numbers = #tpu.dot_dimension_numbers<[1], [0], [0], [1], [0, 0, 1, 1], [], []>} : vector<6x56xf32>, vector<56x384xf32>, vector<6x384xf32> -> vector<6x384xf32>
    %99 = arith.addf %82, %98 : vector<6x384xf32>
    %c0_96 = arith.constant 0 : index
    %c0_97 = arith.constant 0 : index
    %c110 = arith.constant 110 : index
    %100 = vector.load %arg1[%c0_96, %c0_97, %c110] : memref<1x8x640xf32, #tpu.memory_space<vmem>>, vector<1x8x384xf32>
    %101 = vector.shape_cast %100 : vector<1x8x384xf32> to vector<8x384xf32>
    %c0_98 = arith.constant 0 : index
    %c0_99 = arith.constant 0 : index
    %c111 = arith.constant 111 : index
    %102 = vector.load %arg1[%c0_98, %c0_99, %c111] : memref<1x8x640xf32, #tpu.memory_space<vmem>>, vector<1x8x384xf32>
    %103 = vector.shape_cast %102 : vector<1x8x384xf32> to vector<8x384xf32>
    %c0_100 = arith.constant 0 : index
    %c0_101 = arith.constant 0 : index
    %c112 = arith.constant 112 : index
    %104 = vector.load %arg1[%c0_100, %c0_101, %c112] : memref<1x8x640xf32, #tpu.memory_space<vmem>>, vector<1x8x384xf32>
    %105 = vector.shape_cast %104 : vector<1x8x384xf32> to vector<8x384xf32>
    %c0_102 = arith.constant 0 : index
    %c0_103 = arith.constant 0 : index
    %c113 = arith.constant 113 : index
    %106 = vector.load %arg1[%c0_102, %c0_103, %c113] : memref<1x8x640xf32, #tpu.memory_space<vmem>>, vector<1x8x384xf32>
    %107 = vector.shape_cast %106 : vector<1x8x384xf32> to vector<8x384xf32>
    %c0_104 = arith.constant 0 : index
    %c0_105 = arith.constant 0 : index
    %c114 = arith.constant 114 : index
    %108 = vector.load %arg1[%c0_104, %c0_105, %c114] : memref<1x8x640xf32, #tpu.memory_space<vmem>>, vector<1x8x384xf32>
    %109 = vector.shape_cast %108 : vector<1x8x384xf32> to vector<8x384xf32>
    %c0_106 = arith.constant 0 : index
    %c0_107 = arith.constant 0 : index
    %c115 = arith.constant 115 : index
    %110 = vector.load %arg1[%c0_106, %c0_107, %c115] : memref<1x8x640xf32, #tpu.memory_space<vmem>>, vector<1x8x384xf32>
    %111 = vector.shape_cast %110 : vector<1x8x384xf32> to vector<8x384xf32>
    %c0_108 = arith.constant 0 : index
    %c0_109 = arith.constant 0 : index
    %c116 = arith.constant 116 : index
    %112 = vector.load %arg1[%c0_108, %c0_109, %c116] : memref<1x8x640xf32, #tpu.memory_space<vmem>>, vector<1x8x384xf32>
    %113 = vector.shape_cast %112 : vector<1x8x384xf32> to vector<8x384xf32>
    %114 = tpu.concatenate %101, %103, %105, %107, %109, %111, %113 in 0 : vector<8x384xf32>, vector<8x384xf32>, vector<8x384xf32>, vector<8x384xf32>, vector<8x384xf32>, vector<8x384xf32>, vector<8x384xf32> -> vector<56x384xf32>
    %cst_110 = arith.constant dense<0.000000e+00> : vector<6x384xf32>
    %115 = tpu.matmul %11, %114, %cst_110 {dimension_numbers = #tpu.dot_dimension_numbers<[1], [0], [0], [1], [0, 0, 1, 1], [], []>} : vector<6x56xf32>, vector<56x384xf32>, vector<6x384xf32> -> vector<6x384xf32>
    %116 = arith.addf %99, %115 : vector<6x384xf32>
    %c0_111 = arith.constant 0 : index
    %c0_112 = arith.constant 0 : index
    %c132 = arith.constant 132 : index
    %117 = vector.load %arg1[%c0_111, %c0_112, %c132] : memref<1x8x640xf32, #tpu.memory_space<vmem>>, vector<1x8x384xf32>
    %118 = vector.shape_cast %117 : vector<1x8x384xf32> to vector<8x384xf32>
    %c0_113 = arith.constant 0 : index
    %c0_114 = arith.constant 0 : index
    %c133 = arith.constant 133 : index
    %119 = vector.load %arg1[%c0_113, %c0_114, %c133] : memref<1x8x640xf32, #tpu.memory_space<vmem>>, vector<1x8x384xf32>
    %120 = vector.shape_cast %119 : vector<1x8x384xf32> to vector<8x384xf32>
    %c0_115 = arith.constant 0 : index
    %c0_116 = arith.constant 0 : index
    %c134 = arith.constant 134 : index
    %121 = vector.load %arg1[%c0_115, %c0_116, %c134] : memref<1x8x640xf32, #tpu.memory_space<vmem>>, vector<1x8x384xf32>
    %122 = vector.shape_cast %121 : vector<1x8x384xf32> to vector<8x384xf32>
    %c0_117 = arith.constant 0 : index
    %c0_118 = arith.constant 0 : index
    %c135 = arith.constant 135 : index
    %123 = vector.load %arg1[%c0_117, %c0_118, %c135] : memref<1x8x640xf32, #tpu.memory_space<vmem>>, vector<1x8x384xf32>
    %124 = vector.shape_cast %123 : vector<1x8x384xf32> to vector<8x384xf32>
    %c0_119 = arith.constant 0 : index
    %c0_120 = arith.constant 0 : index
    %c136 = arith.constant 136 : index
    %125 = vector.load %arg1[%c0_119, %c0_120, %c136] : memref<1x8x640xf32, #tpu.memory_space<vmem>>, vector<1x8x384xf32>
    %126 = vector.shape_cast %125 : vector<1x8x384xf32> to vector<8x384xf32>
    %c0_121 = arith.constant 0 : index
    %c0_122 = arith.constant 0 : index
    %c137 = arith.constant 137 : index
    %127 = vector.load %arg1[%c0_121, %c0_122, %c137] : memref<1x8x640xf32, #tpu.memory_space<vmem>>, vector<1x8x384xf32>
    %128 = vector.shape_cast %127 : vector<1x8x384xf32> to vector<8x384xf32>
    %c0_123 = arith.constant 0 : index
    %c0_124 = arith.constant 0 : index
    %c138 = arith.constant 138 : index
    %129 = vector.load %arg1[%c0_123, %c0_124, %c138] : memref<1x8x640xf32, #tpu.memory_space<vmem>>, vector<1x8x384xf32>
    %130 = vector.shape_cast %129 : vector<1x8x384xf32> to vector<8x384xf32>
    %131 = tpu.concatenate %118, %120, %122, %124, %126, %128, %130 in 0 : vector<8x384xf32>, vector<8x384xf32>, vector<8x384xf32>, vector<8x384xf32>, vector<8x384xf32>, vector<8x384xf32>, vector<8x384xf32> -> vector<56x384xf32>
    %cst_125 = arith.constant dense<0.000000e+00> : vector<6x384xf32>
    %132 = tpu.matmul %13, %131, %cst_125 {dimension_numbers = #tpu.dot_dimension_numbers<[1], [0], [0], [1], [0, 0, 1, 1], [], []>} : vector<6x56xf32>, vector<56x384xf32>, vector<6x384xf32> -> vector<6x384xf32>
    %133 = arith.addf %116, %132 : vector<6x384xf32>
    %c0_126 = arith.constant 0 : index
    %c0_127 = arith.constant 0 : index
    %134 = vector.load %arg3[%c0_126, %c0_127] : memref<6x1xf32, #tpu.memory_space<vmem>>, vector<6x1xf32>
    %135 = vector.broadcast %134 : vector<6x1xf32> to vector<6x384xf32>
    %136 = arith.addf %133, %135 : vector<6x384xf32>
    %137 = math.tanh %136 : vector<6x384xf32>
    %c0_128 = arith.constant 0 : index
    %c0_129 = arith.constant 0 : index
    %c0_130 = arith.constant 0 : index
    %138 = vector.load %arg4[%c0_128, %c0_129, %c0_130] : memref<1x6x384xf32, #tpu.memory_space<vmem>>, vector<1x6x384xf32>
    %139 = vector.shape_cast %138 : vector<1x6x384xf32> to vector<6x384xf32>
    %140 = vector.shape_cast %137 : vector<6x384xf32> to vector<1x6x384xf32>
    tpu.vector_store %arg4[%c0_128, %c0_129, %c0_130], %140 {strides = array<i32>} : memref<1x6x384xf32, #tpu.memory_space<vmem>>, vector<1x6x384xf32>,
    return
  }
  func.func @transform_0(%arg0: i32) -> (i32, i32, i32) {
    %c0_i32 = arith.constant 0 : i32
    %c0_i32_0 = arith.constant 0 : i32
    %c0_i32_1 = arith.constant 0 : i32
    return %arg0, %c0_i32, %c0_i32_0 : i32, i32, i32
  }
  func.func @transform_1(%arg0: i32) -> (i32, i32, i32) {
    %c0_i32 = arith.constant 0 : i32
    %c0_i32_0 = arith.constant 0 : i32
    %c0_i32_1 = arith.constant 0 : i32
    %c0_i32_2 = arith.constant 0 : i32
    return %c0_i32, %c0_i32_0, %c0_i32_1 : i32, i32, i32
  }
  func.func @transform_2(%arg0: i32) -> (i32, i32) {
    %c0_i32 = arith.constant 0 : i32
    %c0_i32_0 = arith.constant 0 : i32
    %c0_i32_1 = arith.constant 0 : i32
    return %c0_i32, %c0_i32_0 : i32, i32
  }
  func.func @transform_3(%arg0: i32) -> (i32, i32, i32) {
    %c0_i32 = arith.constant 0 : i32
    %c0_i32_0 = arith.constant 0 : i32
    %c0_i32_1 = arith.constant 0 : i32
    return %arg0, %c0_i32, %c0_i32_0 : i32, i32, i32
  }
}

</mosaic_0001>

<bundles_post_ra>
// kernel: tpu_custom_call.1
= control target key start
LH: loop header
LB: loop body
LE: loop exit
PB: predicated region body
PF: predicated region fallthrough
CT: control target
= control target key end

     0   :  { %s2650_s20 = smov 126   ;;  %s2651_s21 = smov 127   ;;  %vm43_vm0 = vcmask 1039360   ;;  %vm58_vm1 = vcmask 1031168   ;;  %vm73_vm2 = vcmask 1022976   ;;  %vm88_vm3 = vcmask 1014784   ;;  %s3532_s0 = inlined_call_operand.vmem [shape: f32[1,8,640], index: 0, kind: input, shape index: {}]   ;;  %s3533_s1 = inlined_call_operand.vmem [shape: f32[7,6,56], index: 1, kind: input, shape index: {}]   ;;  %s3534_s2 = inlined_call_operand.vmem [shape: f32[6,1], index: 2, kind: input, shape index: {}]   ;;  %s3535_s3 = inlined_call_operand.vmem [shape: f32[1,6,384], index: 3, kind: output, shape index: {}]  }
   0x1   :  { %v2688_v0 = vld [vmem:[%s3532_s0 + $0x8] sm:$0xff]  ;;  %v2693_v1 = vld [vmem:[%s3532_s0 + $0x10] sm:$0xff]  ;;  %v2698_v2 = vld [vmem:[%s3532_s0] sm:$0xff]  ;;  %s2652_s22 = smov 125   ;;  %s2653_s23 = smov 124   ;;  %vm103_vm4 = vcmask 1006592  }
   0x2   :  { %v2702_v3 = vpack.i.bf16 %v2693_v1, %v2688_v0  ;;  %v30_v4 = vld [vmem:[%s3532_s0 + $0x18] sm:$0xff]  ;;  %s2654_s24 = smov 123   ;;  %s2655_s25 = smov 122   ;;  %v1500_v6 = vld [vmem:[%s3532_s0 + $0x20] sm:$0xff]  ;;  %vm118_vm5 = vcmask 998400   ;;  %vm2661_vm6 = vmmov 0  }
   0x3   :  { %v2208_v5 = vpack.i.bf16 %v2698_v2, %v30_v4  ;;  %v2253_v7 = vpack.i.bf16 %v2688_v0, %v1500_v6  ;;  %s2656_s28 = smov 106   ;;  %v2248_v8 = vpack.i.bf16 %v30_v4, %v2693_v1  ;;  %s2657_s29 = smov 84   ;;  %vm181_vm7 = vcmask 867328  }
   0x4   :  { %2204 = vrot.lane.b32.xlu1 %v2702_v3, %s2650_s20  ;;  %2194 = vrot.lane.b32.xlu0 %v2702_v3, %s2651_s21  ;;  %s2658_s0 = smov 62   ;;  %s2662_s30 = smov 40   ;;  %vm224_vm8 = vcmask 457728   ;;  %vm569_vm9 = vcmask 687104   ;;  %vm815_vm10 = vcmask 506880   ;;  %vm1061_vm11 = vcmask 326656  }
   0x5   :  { %s2663_s4 = smov 18   ;;  %vm1307_vm12 = vcmask 146432  }
   0x8   :  { %2209 = vrot.lane.b32.xlu1 %v2208_v5, %s2650_s20  ;;  %2199 = vrot.lane.b32.xlu0 %v2208_v5, %s2651_s21 }
   0xc   :  { %2219 = vrot.lane.b32.xlu1 %v2208_v5, %s2652_s22  ;;  %2214 = vrot.lane.b32.xlu0 %v2702_v3, %s2652_s22 }
  0x10   :  { %2229 = vrot.lane.b32.xlu1 %v2208_v5, %s2653_s23  ;;  %2224 = vrot.lane.b32.xlu0 %v2702_v3, %s2653_s23 }
  0x14   :  { %2239 = vrot.lane.b32.xlu1 %v2208_v5, %s2654_s24  ;;  %2234 = vrot.lane.b32.xlu0 %v2702_v3, %s2654_s24 }
  0x18   :  { %114 = vrot.lane.b32.xlu1 %v2693_v1, %s2655_s25  ;;  %112 = vrot.lane.b32.xlu0 %v2688_v0, %s2655_s25 }
  0x1c   :  { %110 = vrot.lane.b32.xlu1 %v2698_v2, %s2655_s25  ;;  %116 = vrot.lane.b32.xlu0 %v30_v4, %s2655_s25 }
  0x20   :  { %2254 = vrot.lane.b32.xlu1 %v2253_v7, %s2651_s21  ;;  %2244 = vrot.lane.b32.xlu0 %v2702_v3, %s2656_s28 }
  0x24   :  { %2269 = vrot.lane.b32.xlu1 %v2253_v7, %s2650_s20  ;;  %2249 = vrot.lane.b32.xlu0 %v2248_v8, %s2651_s21 }
  0x28   :  { %2279 = vrot.lane.b32.xlu1 %v2253_v7, %s2652_s22  ;;  %2259 = vrot.lane.b32.xlu0 %v2702_v3, %s2657_s29 }
  0x2c   :  { %2289 = vrot.lane.b32.xlu1 %v2253_v7, %s2653_s23  ;;  %2264 = vrot.lane.b32.xlu0 %v2248_v8, %s2650_s20 }
  0x30   :  { %2299 = vrot.lane.b32.xlu1 %v2253_v7, %s2654_s24  ;;  %2274 = vrot.lane.b32.xlu0 %v2248_v8, %s2652_s22 }
  0x34   :  { %1564 = vrot.lane.b32.xlu1 %v30_v4, %s2655_s25  ;;  %2284 = vrot.lane.b32.xlu0 %v2248_v8, %s2653_s23 }
  0x38   :  { %1560 = vrot.lane.b32.xlu1 %v2688_v0, %s2655_s25  ;;  %2294 = vrot.lane.b32.xlu0 %v2248_v8, %s2654_s24 }
  0x3c   :  { %2304 = vrot.lane.b32.xlu1 %v2702_v3, %s2658_s0  ;;  %1562 = vrot.lane.b32.xlu0 %v2693_v1, %s2655_s25 }
  0x40   :  { %1566 = vrot.lane.b32.xlu0 %v1500_v6, %s2655_s25 }
  0x76   :  { %v2205_v9 = vpop.permute.xlu1 %2204  ;;  %v2195_v10 = vpop.permute.xlu0 %2194 }
  0x77   :  { %v2197_v11 = vunpack.i.h.bf16 %v2195_v10  ;;  %v2196_v12 = vunpack.i.l.bf16 %v2195_v10  ;;  %v2206_v21 = vunpack.i.l.bf16 %v2205_v9  ;;  %v2207_v32 = vunpack.i.h.bf16 %v2205_v9 }
  0x79   :  { %v2738_v13 = vsel %vm43_vm0, %v2196_v12, %v2197_v11  ;;  %v2781_v44 = vsel %vm58_vm1, %v2206_v21, %v2207_v32 }
  0x7a   :  { %v2210_v14 = vpop.permute.xlu1 %2209  ;;  %v2200_v15 = vpop.permute.xlu0 %2199  ;;  %v2741_v16 = vpack.i.bf16 %v2738_v13, %v30_v4 }
  0x7b   :  { %v2202_v17 = vunpack.i.h.bf16 %v2200_v15  ;;  %v2201_v18 = vunpack.i.l.bf16 %v2200_v15  ;;  %v2212_v22 = vunpack.i.h.bf16 %v2210_v14  ;;  %v2211_v23 = vunpack.i.l.bf16 %v2210_v14 }
  0x7c   :  { %2309 = vrot.lane.b32.xlu1 %v2741_v16, %s2656_s28 }
  0x7d   :  { %v2746_v19 = vsel %vm43_vm0, %v2202_v17, %v2196_v12  ;;  %v2749_v20 = vsel %vm43_vm0, %v2197_v11, %v2201_v18  ;;  %v2767_v35 = vsel %vm58_vm1, %v2212_v22, %v2206_v21  ;;  %v2794_v51 = vsel %vm58_vm1, %v2207_v32, %v2211_v23 }
  0x7e   :  { %v2220_v24 = vpop.permute.xlu1 %2219  ;;  %v2215_v25 = vpop.permute.xlu0 %2214  ;;  %v2753_v26 = vpack.i.bf16 %v2746_v19, %v2698_v2  ;;  %v2758_v31 = vpack.i.bf16 %v2201_v18, %v2749_v20  ;;  %v3540_v12 = vmov 0.0|0.0  }
  0x7f   :  { %v2222_v27 = vunpack.i.h.bf16 %v2220_v24  ;;  %v2221_v28 = vunpack.i.l.bf16 %v2220_v24  ;;  %v2217_v29 = vunpack.i.h.bf16 %v2215_v25  ;;  %v2216_v30 = vunpack.i.l.bf16 %v2215_v25  ;;  %2031 = vmatprep.subr.bf16.mxu1 %v3540_v12 }
  0x80   :  { %2319 = vrot.lane.b32.xlu1 %v2753_v26, %s2656_s28  ;;  %v2870_v25 = vpack.i.bf16 %v2794_v51, %v2781_v44 }
  0x81   :  { %v2761_v33 = vsel %vm73_vm2, %v2217_v29, %v2221_v28  ;;  %v2764_v34 = vsel %vm73_vm2, %v2216_v30, %v2217_v29  ;;  %v2773_v39 = vsel %vm73_vm2, %v2222_v27, %v2216_v30 }
  0x82   :  { %v2230_v36 = vpop.permute.xlu1 %2229  ;;  %v2225_v37 = vpop.permute.xlu0 %2224  ;;  %v2770_v38 = vpack.i.bf16 %v2764_v34, %v2211_v23  ;;  %v2778_v43 = vpack.i.bf16 %v2221_v28, %v2761_v33  ;;  %v2791_v50 = vpack.i.bf16 %v2773_v39, %v2767_v35 }
  0x83   :  { %v2231_v40 = vunpack.i.l.bf16 %v2230_v36  ;;  %v2227_v41 = vunpack.i.h.bf16 %v2225_v37  ;;  %v2226_v42 = vunpack.i.l.bf16 %v2225_v37  ;;  %v2232_v47 = vunpack.i.h.bf16 %v2230_v36 }
  0x84   :  { %2329 = vrot.lane.b32.xlu1 %v2770_v38, %s2656_s28 }
  0x85   :  { %v2784_v45 = vsel %vm88_vm3, %v2227_v41, %v2231_v40  ;;  %v2787_v46 = vsel %vm88_vm3, %v2226_v42, %v2227_v41  ;;  %v2819_v5 = vsel %vm88_vm3, %v2232_v47, %v2226_v42 }
  0x86   :  { %3551 = vst [vmem:[#allocation2_spill] sm:$0xff] %v2784_v45  ;;  %3552 = vst [vmem:[#allocation3_spill] sm:$0xff] %v2787_v46  ;;  %v2240_v48 = vpop.permute.xlu1 %2239  ;;  %v2235_v49 = vpop.permute.xlu0 %2234  ;;  %v2798_v52 = vpack.i.bf16 %v2784_v45, %v2787_v46 }
  0x87   :  { %v2242_v53 = vunpack.i.h.bf16 %v2240_v48  ;;  %v2241_v54 = vunpack.i.l.bf16 %v2240_v48  ;;  %v2237_v55 = vunpack.i.h.bf16 %v2235_v49  ;;  %v2236_v56 = vunpack.i.l.bf16 %v2235_v49  ;;  %3556 = vst [vmem:[#allocation7_spill] sm:$0xff] %v2819_v5 }
  0x88   :  { %2339 = vrot.lane.b32.xlu1 %v2791_v50, %s2656_s28 }
  0x89   :  { %v2805_v58 = vsel %vm103_vm4, %v2242_v53, %v2236_v56  ;;  %v2808_v59 = vsel %vm103_vm4, %v2236_v56, %v2237_v55  ;;  %v2813_v61 = vsel %vm103_vm4, %v2237_v55, %v2241_v54  ;;  %v3537_v53 = vmov 0.0  }
  0x8a   :  { %3553 = vst [vmem:[#allocation4_spill] sm:$0xff] %v2805_v58  ;;  %3554 = vst [vmem:[#allocation5_spill] sm:$0xff] %v2808_v59  ;;  %v115_v62 = vpop.permute.xlu1 %114  ;;  %v113_v63 = vpop.permute.xlu0 %112  ;;  %v2816_v4 = vpack.i.bf16 %v2808_v59, %v2231_v40  ;;  %v2825_v6 = vpack.i.bf16 %v2805_v58, %v2819_v5  ;;  %v2828_v7 = vpack.i.bf16 %v2241_v54, %v2813_v61  ;;  %292 = vmatprep.mubr.f32.mxu0 %v3537_v53 }
  0x8b   :  { %3555 = vst [vmem:[#allocation6_spill] sm:$0xff] %v2813_v61  ;;  %1914 = vmatprep.mubr.msk.f32.mxu1 %vm2661_vm6, %v3537_v53  ;;  %v2922_v55 = vsel %vm118_vm5, %v113_v63, %v115_v62 }
  0x8c   :  { %2349 = vrot.lane.b32.xlu1 %v2816_v4, %s2656_s28 }
  0x8e   :  { %v111_v8 = vpop.permute.xlu1 %110  ;;  %v2830_v9 = vpop.permute.xlu0 %116 }
  0x8f   :  { %179 = vrot.lane.b32.xlu0 %v2830_v9, %s2656_s28  ;;  %v2853_v21 = vsel %vm118_vm5, %v115_v62, %v2830_v9  ;;  %v2862_v24 = vsel %vm118_vm5, %v111_v8, %v113_v63 }
  0x90   :  { %2359 = vrot.lane.b32.xlu1 %v2825_v6, %s2656_s28 }
  0x92   :  { %v2845_v17 = vpop.permute.xlu1 %2254  ;;  %v2847_v18 = vpop.permute.xlu0 %2244 }
  0x93   :  { %567 = vrot.lane.b32.xlu0 %v2830_v9, %s2657_s29  ;;  %v2247_v53 = vunpack.i.h.bf16 %v2847_v18  ;;  %v2246_v49 = vunpack.i.l.bf16 %v2847_v18  ;;  %v3563_v61 = vunpack.i.l.bf16 %v2845_v17 }
  0x94   :  { %177 = vrot.lane.b32.xlu1 %v2853_v21, %s2656_s28 }
  0x96   :  { %v2857_v22 = vpop.permute.xlu1 %2269  ;;  %v2859_v23 = vpop.permute.xlu0 %2249 }
  0x97   :  { %2314 = vrot.lane.b32.xlu0 %v2758_v31, %s2656_s28  ;;  %v2272_v30 = vunpack.i.h.bf16 %v2857_v22 }
  0x98   :  { %173 = vrot.lane.b32.xlu1 %v2862_v24, %s2656_s28 }
  0x9a   :  { %v2872_v27 = vpop.permute.xlu0 %2259  ;;  %v2878_v28 = vpop.permute.xlu1 %2279 }
  0x9b   :  { %3557 = vst [vmem:[#allocation8_spill] sm:$0xff] %v2872_v27  ;;  %2324 = vrot.lane.b32.xlu0 %v2870_v25, %s2656_s28  ;;  %v2282_v36 = vunpack.i.h.bf16 %v2878_v28 }
  0x9c   :  { %2364 = vrot.lane.b32.xlu1 %v2741_v16, %s2657_s29 }
  0x9e   :  { %v2880_v29 = vpop.permute.xlu0 %2264  ;;  %v2889_v37 = vpop.permute.xlu1 %2289 }
  0x9f   :  { %2334 = vrot.lane.b32.xlu0 %v2778_v43, %s2656_s28  ;;  %v3536_v32 = vunpack.i.l.bf16 %v2880_v29 }
  0xa0   :  { %2374 = vrot.lane.b32.xlu1 %v2753_v26, %s2657_s29 }
  0xa1   :  { %v2898_v41 = vsel %vm58_vm1, %v2272_v30, %v3536_v32 }
  0xa2   :  { %v2891_v40 = vpop.permute.xlu0 %2274  ;;  %v2919_v54 = vpop.permute.xlu1 %2299 }
  0xa3   :  { %2344 = vrot.lane.b32.xlu0 %v2798_v52, %s2656_s28  ;;  %v3539_v42 = vunpack.i.l.bf16 %v2891_v40 }
  0xa4   :  { %2384 = vrot.lane.b32.xlu1 %v2770_v38, %s2657_s29 }
  0xa5   :  { %v2906_v47 = vsel %vm73_vm2, %v2282_v36, %v3539_v42 }
  0xa6   :  { %v2908_v48 = vpop.permute.xlu0 %2284  ;;  %v2930_v8 = vpop.permute.xlu1 %1564 }
  0xa7   :  { %2354 = vrot.lane.b32.xlu0 %v2828_v7, %s2656_s28 }
  0xa8   :  { %2394 = vrot.lane.b32.xlu1 %v2791_v50, %s2657_s29 }
  0xaa   :  { %v2924_v56 = vpop.permute.xlu0 %2294  ;;  %v2991_v63 = vpop.permute.xlu1 %1560 }
  0xab   :  { %175 = vrot.lane.b32.xlu0 %v2922_v55, %s2656_s28  ;;  %3560 = vst [vmem:[#allocation11_spill] sm:$0xff] %v2991_v63 }
  0xac   :  { %2404 = vrot.lane.b32.xlu1 %v2816_v4, %s2657_s29 }
  0xae   :  { %v2932_v30 = vpop.permute.xlu0 %1562  ;;  %v3001_v36 = vpop.permute.xlu1 %2304 }
  0xaf   :  { %3558 = vst [vmem:[#allocation9_spill] sm:$0xff] %v2932_v30  ;;  %2369 = vrot.lane.b32.xlu0 %v2758_v31, %s2657_s29  ;;  %v2939_v62 = vsel %vm118_vm5, %v2932_v30, %v2930_v8  ;;  %3561 = vst [vmem:[#allocation12_spill] sm:$0xff] %v3001_v36 }
  0xb0   :  { %3559 = vst [vmem:[#allocation10_spill] sm:$0xff] %v2939_v62  ;;  %2414 = vrot.lane.b32.xlu1 %v2825_v6, %s2657_s29 }
  0xb2   :  { %v3027_v60 = vpop.permute.xlu0 %1566 }
  0xb3   :  { %2379 = vrot.lane.b32.xlu0 %v2870_v25, %s2657_s29 }
  0xb4   :  { %565 = vrot.lane.b32.xlu1 %v2853_v21, %s2657_s29 }
  0xb7   :  { %2389 = vrot.lane.b32.xlu0 %v2778_v43, %s2657_s29 }
  0xb8   :  { %2424 = vrot.lane.b32.xlu1 %v2758_v31, %s2658_s0 }
  0xbb   :  { %2399 = vrot.lane.b32.xlu0 %v2798_v52, %s2657_s29 }
  0xbc   :  { %2429 = vrot.lane.b32.xlu1 %v2753_v26, %s2658_s0 }
  0xbf   :  { %2409 = vrot.lane.b32.xlu0 %v2828_v7, %s2657_s29 }
  0xc0   :  { %2439 = vrot.lane.b32.xlu1 %v2770_v38, %s2658_s0 }
  0xc3   :  { %563 = vrot.lane.b32.xlu0 %v2922_v55, %s2657_s29 }
  0xc4   :  { %2449 = vrot.lane.b32.xlu1 %v2791_v50, %s2658_s0 }
  0xc7   :  { %2419 = vrot.lane.b32.xlu0 %v2741_v16, %s2658_s0 }
  0xc8   :  { %2459 = vrot.lane.b32.xlu1 %v2816_v4, %s2658_s0 }
  0xcb   :  { %561 = vrot.lane.b32.xlu0 %v2862_v24, %s2657_s29 }
  0xcc   :  { %2469 = vrot.lane.b32.xlu1 %v2825_v6, %s2658_s0 }
  0xcf   :  { %2434 = vrot.lane.b32.xlu0 %v2870_v25, %s2658_s0 }
  0xd0   :  { %811 = vrot.lane.b32.xlu1 %v2853_v21, %s2658_s0 }
  0xd3   :  { %2444 = vrot.lane.b32.xlu0 %v2778_v43, %s2658_s0 }
  0xd4   :  { %2474 = vrot.lane.b32.xlu1 %v2702_v3, %s2662_s30 }
  0xd7   :  { %2454 = vrot.lane.b32.xlu0 %v2798_v52, %s2658_s0 }
  0xd8   :  { %2484 = vrot.lane.b32.xlu1 %v2758_v31, %s2662_s30 }
  0xdb   :  { %2464 = vrot.lane.b32.xlu0 %v2828_v7, %s2658_s0 }
  0xdc   :  { %2489 = vrot.lane.b32.xlu1 %v2753_v26, %s2662_s30 }
  0xdf   :  { %809 = vrot.lane.b32.xlu0 %v2922_v55, %s2658_s0 }
  0xe0   :  { %2499 = vrot.lane.b32.xlu1 %v2770_v38, %s2662_s30 }
  0xe3   :  { %813 = vrot.lane.b32.xlu0 %v2830_v9, %s2658_s0 }
  0xe4   :  { %2509 = vrot.lane.b32.xlu1 %v2791_v50, %s2662_s30 }
  0xe7   :  { %2479 = vrot.lane.b32.xlu0 %v2741_v16, %s2662_s30 }
  0xe8   :  { %2519 = vrot.lane.b32.xlu1 %v2816_v4, %s2662_s30 }
  0xeb   :  { %807 = vrot.lane.b32.xlu0 %v2862_v24, %s2658_s0 }
  0xec   :  { %2529 = vrot.lane.b32.xlu1 %v2825_v6, %s2662_s30 }
  0xee   :  { %v2310_v15 = vpop.permute.xlu1 %2309 }
  0xef   :  { %2494 = vrot.lane.b32.xlu0 %v2870_v25, %s2662_s30  ;;  %v2311_v42 = vunpack.i.l.bf16 %v2310_v15  ;;  %v2312_v5 = vunpack.i.h.bf16 %v2310_v15 }
  0xf0   :  { %1057 = vrot.lane.b32.xlu1 %v2853_v21, %s2662_s30 }
  0xf2   :  { %v2320_v14 = vpop.permute.xlu1 %2319 }
  0xf3   :  { %2504 = vrot.lane.b32.xlu0 %v2778_v43, %s2662_s30  ;;  %v2321_v12 = vunpack.i.l.bf16 %v2320_v14 }
  0xf4   :  { %2534 = vrot.lane.b32.xlu1 %v2702_v3, %s2663_s4 }
  0xf5   :  { %v182_v15 = vsel %vm181_vm7, %v2321_v12, %v2246_v49 }
  0xf6   :  { %v3015_v11 = vpop.permute.xlu1 %2329 }
  0xf7   :  { %2514 = vrot.lane.b32.xlu0 %v2798_v52, %s2662_s30  ;;  %v2331_v12 = vunpack.i.l.bf16 %v3015_v11 }
  0xf8   :  { %2544 = vrot.lane.b32.xlu1 %v2758_v31, %s2663_s4 }
  0xfa   :  { %v3021_v10 = vpop.permute.xlu1 %2339 }
  0xfb   :  { %2524 = vrot.lane.b32.xlu0 %v2828_v7, %s2662_s30 }
  0xfc   :  { %2549 = vrot.lane.b32.xlu1 %v2753_v26, %s2663_s4 }
  0xfe   :  { %v3029_v57 = vpop.permute.xlu1 %2349 }
  0xff   :  { %1055 = vrot.lane.b32.xlu0 %v2922_v55, %s2662_s30 }
 0x100   :  { %2559 = vrot.lane.b32.xlu1 %v2770_v38, %s2663_s4  ;;  %v2322_v38 = vunpack.i.h.bf16 %v2320_v14 }
 0x101   :  { %v3035_v3 = vpop.permute.xlu0 %179 }
 0x102   :  { %v3037_v31 = vpop.permute.xlu1 %2359 }
 0x103   :  { %1059 = vrot.lane.b32.xlu0 %v2830_v9, %s2662_s30 }
 0x104   :  { %2569 = vrot.lane.b32.xlu1 %v2791_v50, %s2663_s4 }
 0x105   :  { %v3043_v26 = vpop.permute.xlu0 %567 }
 0x106   :  { %3562 = vst [vmem:[#allocation13_spill] sm:$0xff] %v3043_v26  ;;  %v3045_v32 = vpop.permute.xlu1 %177  ;;  %v2252_v26 = vunpack.i.h.bf16 %v2859_v23 }
 0x107   :  { %2539 = vrot.lane.b32.xlu0 %v2741_v16, %s2663_s4  ;;  %v183_v16 = vsel %vm181_vm7, %v2246_v49, %v2247_v53 }
 0x108   :  { %2579 = vrot.lane.b32.xlu1 %v2816_v4, %s2663_s4  ;;  %v184_v4 = vsel %vm181_vm7, %v2247_v53, %v2311_v42  ;;  %v1515_v46 = vsel %vm43_vm0, %v2252_v26, %v3563_v61  ;;  %v3564_v42 = vunpack.i.l.bf16 %v2859_v23  ;;  %v2332_v61 = vunpack.i.h.bf16 %v3015_v11 }
 0x109   :  { %v2315_v62 = vpop.permute.xlu0 %2314 }
 0x10a   :  { %v2317_v58 = vunpack.i.h.bf16 %v2315_v62  ;;  %v2316_v18 = vunpack.i.l.bf16 %v2315_v62  ;;  %v3056_v63 = vpop.permute.xlu1 %173  ;;  %v185_v62 = vsel %vm181_vm7, %v2322_v38, %v2312_v5  ;;  %v1514_v53 = vsel %vm43_vm0, %v3564_v42, %v2252_v26 }
 0x10b   :  { %1053 = vrot.lane.b32.xlu0 %v2862_v24, %s2662_s30  ;;  %v2593_v26 = vpack.i.bf16 %v1515_v46, %v1514_v53  ;;  %v3565_v38 = vmov 0.0|0.0  }
 0x10c   :  { %2589 = vrot.lane.b32.xlu1 %v2825_v6, %s2663_s4  ;;  %v186_v14 = vsel %vm181_vm7, %v2312_v5, %v2316_v18  ;;  %v187_v50 = vsel %vm181_vm7, %v2316_v18, %v2317_v58  ;;  %v2021_v58 = vpack.c.bf16 %v185_v62, %v182_v15  ;;  %v2277_v5 = vunpack.i.h.bf16 %v2891_v40 }
 0x10d   :  { %v2325_v36 = vpop.permute.xlu0 %2324  ;;  %v2019_v30 = vpack.c.bf16 %v186_v14, %v183_v16  ;;  %v2032_v45 = vpack.c.bf16 %v187_v50, %v184_v4 }
 0x10e   :  { %v3074_v6 = vpop.permute.xlu1 %2364  ;;  %v2327_v59 = vunpack.i.h.bf16 %v2325_v36  ;;  %v2326_v27 = vunpack.i.l.bf16 %v2325_v36  ;;  %v2342_v36 = vunpack.i.h.bf16 %v3021_v10 }
 0x10f   :  { %2554 = vrot.lane.b32.xlu0 %v2870_v25, %s2663_s4  ;;  %2020 = vmatprep.subr.bf16.mxu0 %v2019_v30  ;;  %v2341_v25 = vunpack.i.l.bf16 %v3021_v10  ;;  %v2271_v10 = vunpack.i.l.bf16 %v2857_v22 }
 0x110   :  { %2033 = vmatpush3.bf16.msra.mxu1 %v2032_v45  ;;  %1303 = vrot.lane.b32.xlu1 %v2853_v21, %s2663_s4  ;;  %v189_v18 = vsel %vm181_vm7, %v2326_v27, %v2327_v59  ;;  %v190_v46 = vsel %vm181_vm7, %v2327_v59, %v2331_v12 }
 0x111   :  { %2022 = vmatpush1.bf16.msra.mxu0 %v2021_v58  ;;  %v2335_v49 = vpop.permute.xlu0 %2334  ;;  %2034 = vmatprep.subr.bf16.mxu1 %v3565_v38  ;;  %v188_v4 = vsel %vm181_vm7, %v2341_v25, %v2326_v27  ;;  %v191_v58 = vsel %vm181_vm7, %v2342_v36, %v2332_v61  ;;  %v2362_v36 = vunpack.i.h.bf16 %v3037_v31 }
 0x112   :  { %v2337_v30 = vunpack.i.h.bf16 %v2335_v49  ;;  %v2336_v45 = vunpack.i.l.bf16 %v2335_v49  ;;  %v3086_v50 = vpop.permute.xlu1 %2374  ;;  %v2025_v27 = vpack.c.bf16 %v191_v58, %v188_v4  ;;  %v2352_v49 = vunpack.i.h.bf16 %v3029_v57 }
 0x113   :  { %2564 = vrot.lane.b32.xlu0 %v2778_v43, %s2663_s4  ;;  %v3566_v43 = vunpack.i.l.bf16 %v2891_v40  ;;  %v3574_v40 = vpack.c.bf16 %v2773_v39, %v2767_v35  ;;  %v2367_v35 = vunpack.i.h.bf16 %v3074_v6 }
 0x114   :  { %2594 = vrot.lane.b32.xlu1 %v2593_v26, %s2653_s23  ;;  %v192_v11 = vsel %vm181_vm7, %v2332_v61, %v2336_v45  ;;  %v193_v16 = vsel %vm181_vm7, %v2336_v45, %v2337_v30  ;;  %v2351_v26 = vunpack.i.l.bf16 %v3029_v57 }
 0x115   :  { %v2345_v14 = vpop.permute.xlu0 %2344  ;;  %v2023_v15 = vpack.c.bf16 %v192_v11, %v189_v18  ;;  %v2035_v62 = vpack.c.bf16 %v193_v16, %v190_v46  ;;  %v1536_v42 = vsel %vm73_vm2, %v3566_v43, %v2277_v5  ;;  %v2297_v11 = vunpack.i.h.bf16 %v2924_v56 }
 0x116   :  { %v3102_v53 = vpop.permute.xlu1 %2384  ;;  %v2347_v59 = vunpack.i.h.bf16 %v2345_v14  ;;  %v2346_v12 = vunpack.i.l.bf16 %v2345_v14  ;;  %v2608_v61 = vpack.i.bf16 %v1536_v42, %v2271_v10  ;;  %v2296_v46 = vunpack.i.l.bf16 %v2924_v56  ;;  %v3585_v56 = vld [vmem:[#allocation7_spill] sm:$0xff] }
 0x117   :  { %2574 = vrot.lane.b32.xlu0 %v2798_v52, %s2663_s4  ;;  %2024 = vmatprep.subr.bf16.mxu0 %v2023_v15  ;;  %v2361_v52 = vunpack.i.l.bf16 %v3037_v31  ;;  %v2291_v42 = vunpack.i.l.bf16 %v2889_v37 }
 0x118   :  { %2036 = vmatpush3.bf16.msra.mxu1 %v2035_v62  ;;  %1299 = vrot.lane.b32.xlu1 %v2862_v24, %s2663_s4  ;;  %v195_v57 = vsel %vm181_vm7, %v2346_v12, %v2347_v59  ;;  %v196_v4 = vsel %vm181_vm7, %v2347_v59, %v2351_v26  ;;  %v2302_v26 = vunpack.i.h.bf16 %v2919_v54 }
 0x119   :  { %2026 = vmatpush1.bf16.msra.mxu0 %v2025_v27  ;;  %v2355_v25 = vpop.permute.xlu0 %2354  ;;  %2037 = vmatprep.subr.bf16.mxu1 %v3565_v38  ;;  %v194_v14 = vsel %vm181_vm7, %v2361_v52, %v2346_v12  ;;  %v2257_v27 = vunpack.i.h.bf16 %v2845_v17  ;;  %v2292_v12 = vunpack.i.h.bf16 %v2889_v37  ;;  %v3583_v37 = vld [vmem:[#allocation11_spill] sm:$0xff] }
 0x11a   :  { %v2357_v30 = vunpack.i.h.bf16 %v2355_v25  ;;  %v2356_v45 = vunpack.i.l.bf16 %v2355_v25  ;;  %v3116_v18 = vpop.permute.xlu1 %2394  ;;  %v1558_v25 = vsel %vm103_vm4, %v2296_v46, %v2297_v11 }
 0x11b   :  { %2584 = vrot.lane.b32.xlu0 %v2828_v7, %s2663_s4  ;;  %v197_v7 = vsel %vm181_vm7, %v2362_v36, %v2352_v49 }
 0x11c   :  { %2609 = vrot.lane.b32.xlu1 %v2608_v61, %s2653_s23  ;;  %v198_v16 = vsel %vm181_vm7, %v2352_v49, %v2356_v45  ;;  %v199_v31 = vsel %vm181_vm7, %v2356_v45, %v2357_v30  ;;  %v2029_v59 = vpack.c.bf16 %v197_v7, %v194_v14  ;;  %v2286_v61 = vunpack.i.l.bf16 %v2908_v48  ;;  %v1824_v14 = vld [vmem:[%s3533_s1 + $0x8] sm:$0x3f] }
 0x11d   :  { %v176_v15 = vpop.permute.xlu0 %175  ;;  %v2027_v62 = vpack.c.bf16 %v198_v16, %v195_v57  ;;  %v2038_v43 = vpack.c.bf16 %v199_v31, %v196_v4  ;;  %v3567_v49 = vpack.i.bf16 %v2906_v47, %v2898_v41  ;;  %v3568_v30 = vmov 0.0  }
 0x11e   :  { %v3129_v58 = vpop.permute.xlu1 %2404  ;;  %v201_v52 = vsel %vm181_vm7, %v176_v15, %v3045_v32  ;;  %v2628_v45 = vpack.i.bf16 %v1558_v25, %v2291_v42  ;;  %v2040_v16 = vpack.c.bf16 %v2738_v13, %v2688_v0  ;;  %v3569_v41 = vunpack.i.l.bf16 %v2859_v23 }
 0x11f   :  { %1301 = vrot.lane.b32.xlu0 %v2922_v55, %s2663_s4  ;;  %2028 = vmatprep.subr.bf16.mxu0 %v2027_v62  ;;  %v2267_v4 = vunpack.i.h.bf16 %v2880_v29  ;;  %v202_v31 = vsel %vm181_vm7, %v3045_v32, %v3035_v3  ;;  %v3171_v0 = vsel %vm88_vm3, %v2292_v12, %v2286_v61  ;;  %v1557_v13 = vsel %vm103_vm4, %v2302_v26, %v2296_v46  ;;  %v3576_v12 = vld [vmem:[#allocation5_spill] sm:$0xff] }
 0x120   :  { %2039 = vmatpush3.bf16.msra.mxu1 %v2038_v43  ;;  %2619 = vrot.lane.b32.xlu1 %v3567_v49, %s2653_s23  ;;  %v1513_v47 = vsel %vm43_vm0, %v2257_v27, %v3569_v41  ;;  %v2053_v32 = vpack.c.bf16 %v2749_v20, %v2693_v1  ;;  %v2042_v46 = vpack.c.bf16 %v2746_v19, %v2698_v2  ;;  %v3570_v62 = vunpack.i.l.bf16 %v2845_v17  ;;  %v3579_v41 = vld [vmem:[#allocation6_spill] sm:$0xff] }
 0x121   :  { %2030 = vmatpush1.bf16.msra.mxu0 %v2029_v59  ;;  %v3145_v36 = vpop.permute.xlu0 %2369  ;;  %1912 = vmatprep.subr.mxu1 %v3568_v30  ;;  %v3571_v7 = vunpack.i.l.bf16 %v2880_v29  ;;  %v2638_v20 = vpack.i.bf16 %v1557_v13, %v3171_v0  ;;  %v3572_v2 = vpack.c.bf16 %v2764_v34, %v2781_v44  ;;  %v2287_v34 = vunpack.i.h.bf16 %v2908_v48  ;;  %v3584_v13 = vld [vmem:[#allocation4_spill] sm:$0xff] }
 0x122   :  { %240 = vmatprep.subr.mxu0 %v201_v52  ;;  %v3152_v57 = vpop.permute.xlu1 %2414  ;;  %v2598_v43 = vpack.i.bf16 %v1513_v47, %v3570_v62  ;;  %v3573_v44 = vpack.c.bf16 %v2761_v33, %v2794_v51  ;;  %v2377_v27 = vunpack.i.h.bf16 %v3086_v50  ;;  %v2372_v51 = vunpack.i.h.bf16 %v3145_v36  ;;  %v3580_v47 = vld [vmem:[#allocation2_spill] sm:$0xff] }
 0x123   :  { %1305 = vrot.lane.b32.xlu0 %v2830_v9, %s2663_s4  ;;  %v200_v9 = vsel %vm181_vm7, %v3056_v63, %v176_v15  ;;  %v2281_v63 = vunpack.i.l.bf16 %v2878_v28  ;;  %v1526_v15 = vsel %vm58_vm1, %v2267_v4, %v2271_v10  ;;  %v1525_v1 = vsel %vm58_vm1, %v3571_v7, %v2267_v4 }
 0x124   :  { %1913 = vmatpush3.msra.mxu1 %v202_v31  ;;  %2629 = vrot.lane.b32.xlu1 %v2628_v45, %s2653_s23  ;;  %v2603_v22 = vpack.i.bf16 %v1526_v15, %v1525_v1  ;;  %v2301_v28 = vunpack.i.l.bf16 %v2919_v54  ;;  %v1570_v10 = vsel %vm118_vm5, %v2930_v8, %v3027_v60  ;;  %v2376_v54 = vunpack.i.l.bf16 %v3086_v50  ;;  %v3577_v8 = vld [vmem:[#allocation3_spill] sm:$0xff]  ;;  %v3582_v31 = vld [vmem:[#allocation9_spill] sm:$0xff]  ;;  %v14_v1 = vld [vmem:[%s3533_s1] sm:$0x3f] }
 0x125   :  { %241 = vmatpush1.msra.mxu0 %v200_v9  ;;  %2052 = vmatprep.subr.bf16.mxu1 %v3565_v38  ;;  %v3178_v23 = vpop.permute.xlu0 %2379  ;;  %v1537_v29 = vsel %vm73_vm2, %v2277_v5, %v2281_v63  ;;  %v3575_v5 = vld [vmem:[#allocation8_spill] sm:$0xff]  ;;  %v2371_v59 = vunpack.i.l.bf16 %v3145_v36  ;;  %v3578_v26 = vpack.c.bf16 %v3576_v12, %v3577_v8  ;;  %v3245_v36 = vsel %vm88_vm3, %v2287_v34, %v2291_v42 }
 0x126   :  { %1915 = vmatmul.mubr.msk.f32.vlgmr.msra.gmra.mrb[0].mxu1 %vm224_vm8, %v1824_v14  ;;  %2041 = vmatprep.subr.bf16.mxu0 %v2040_v16  ;;  %v3183_v3 = vpop.permute.xlu1 %565  ;;  %v2262_v25 = vunpack.i.h.bf16 %v3575_v5  ;;  %v2261_v33 = vunpack.i.l.bf16 %v3575_v5  ;;  %v2613_v49 = vpack.i.bf16 %v2281_v63, %v1537_v29  ;;  %v3250_v52 = vsel %vm88_vm3, %v2286_v61, %v2287_v34 }
 0x127   :  { %2054 = vmatpush3.bf16.msra.mxu1 %v2053_v32  ;;  %1830 = vmatmul.mubr.msk.f32.vlgmr.msra.gmra.mrb[0].mxu0 %vm224_vm8, %v1824_v14  ;;  %v1559_v45 = vsel %vm103_vm4, %v2297_v11, %v2301_v28  ;;  %v2366_v16 = vunpack.i.l.bf16 %v3074_v6  ;;  %v3581_v4 = vpack.c.bf16 %v3579_v41, %v3580_v47  ;;  %v1568_v42 = vsel %vm118_vm5, %v3583_v37, %v3582_v31 }
 0x128   :  { %2043 = vmatpush1.bf16.msra.mxu0 %v2042_v46  ;;  %2599 = vrot.lane.b32.xlu0 %v2598_v43, %s2653_s23  ;;  %v570_v14 = vsel %vm569_vm9, %v2376_v54, %v2261_v33  ;;  %v573_v48 = vsel %vm569_vm9, %v2377_v27, %v2367_v35  ;;  %v3586_v9 = vpack.c.bf16 %v3584_v13, %v3585_v56  ;;  %v2387_v43 = vunpack.i.h.bf16 %v3102_v53 }
 0x129   :  { %2045 = vmatprep.subr.bf16.mxu0 %v3572_v2  ;;  %2639 = vrot.lane.b32.xlu1 %v2638_v20, %s2653_s23  ;;  %v3203_v19 = vpop.permute.xlu0 %2389  ;;  %v575_v6 = vsel %vm569_vm9, %v2371_v59, %v2372_v51  ;;  %v571_v46 = vsel %vm569_vm9, %v2261_v33, %v2262_v25  ;;  %v574_v62 = vsel %vm569_vm9, %v2367_v35, %v2371_v59  ;;  %v2382_v63 = vunpack.i.h.bf16 %v3178_v23 }
 0x12a   :  { %2055 = vmatprep.subr.bf16.mxu1 %v3565_v38  ;;  %v3206_v17 = vpop.permute.xlu1 %2424  ;;  %1931 = vmatprep.mubr.msk.f32.mxu1 %vm2661_vm6, %v3568_v30  ;;  %v2391_v61 = vunpack.i.l.bf16 %v3203_v19  ;;  %v2392_v11 = vunpack.i.h.bf16 %v3203_v19  ;;  %v2381_v15 = vunpack.i.l.bf16 %v3178_v23  ;;  %v2633_v20 = vpack.i.bf16 %v2301_v28, %v1559_v45 }
 0x12b   :  { %2057 = vmatpush3.bf16.msra.mxu1 %v3573_v44  ;;  %436 = vmatprep.mubr.f32.mxu0 %v3568_v30  ;;  %v572_v2 = vsel %vm569_vm9, %v2262_v25, %v2366_v16  ;;  %v2063_v19 = vpack.c.bf16 %v573_v48, %v570_v14  ;;  %v2061_v34 = vpack.c.bf16 %v574_v62, %v571_v46  ;;  %v2396_v28 = vunpack.i.l.bf16 %v3116_v18  ;;  %v3587_v48 = vld [vmem:[#allocation12_spill] sm:$0xff] }
 0x12c   :  { %2047 = vmatpush1.bf16.msra.mxu0 %v3574_v40  ;;  %2604 = vrot.lane.b32.xlu0 %v2603_v22, %s2653_s23  ;;  %v2397_v22 = vunpack.i.h.bf16 %v3116_v18  ;;  %v2074_v23 = vpack.c.bf16 %v575_v6, %v572_v2  ;;  %v580_v44 = vsel %vm569_vm9, %v2387_v43, %v2391_v61  ;;  %v581_v27 = vsel %vm569_vm9, %v2391_v61, %v2392_v11  ;;  %v3588_v6 = vld [vmem:[#allocation10_spill] sm:$0xff] }
 0x12d   :  { %2049 = vmatprep.subr.bf16.mxu0 %v3578_v26  ;;  %1615 = vrot.lane.b32.xlu1 %v1570_v10, %s2653_s23  ;;  %v3236_v50 = vpop.permute.xlu0 %2399  ;;  %v2386_v10 = vunpack.i.l.bf16 %v3102_v53  ;;  %v577_v53 = vsel %vm569_vm9, %v2381_v15, %v2382_v63  ;;  %v576_v33 = vsel %vm569_vm9, %v2396_v28, %v2381_v15  ;;  %v2406_v26 = vunpack.i.l.bf16 %v3129_v58 }
 0x12e   :  { %2058 = vmatprep.subr.bf16.mxu1 %v3565_v38  ;;  %v3240_v39 = vpop.permute.xlu1 %2429  ;;  %v2402_v40 = vunpack.i.h.bf16 %v3236_v50  ;;  %v2401_v5 = vunpack.i.l.bf16 %v3236_v50  ;;  %v2065_v51 = vpack.c.bf16 %v580_v44, %v577_v53  ;;  %v579_v59 = vsel %vm569_vm9, %v2397_v22, %v2387_v43 }
 0x12f   :  { %2060 = vmatpush3.bf16.msra.mxu1 %v3581_v4  ;;  %v578_v25 = vsel %vm569_vm9, %v2382_v63, %v2386_v10  ;;  %v2417_v50 = vunpack.i.h.bf16 %v3152_v57  ;;  %v2416_v35 = vunpack.i.l.bf16 %v3152_v57  ;;  %v2067_v16 = vpack.c.bf16 %v579_v59, %v576_v33 }
 0x130   :  { %2051 = vmatpush1.bf16.msra.mxu0 %v3586_v9  ;;  %2614 = vrot.lane.b32.xlu0 %v2613_v49, %s2653_s23  ;;  %v2077_v12 = vpack.c.bf16 %v581_v27, %v578_v25  ;;  %v583_v41 = vsel %vm569_vm9, %v2401_v5, %v2402_v40  ;;  %v2664_v37 = vmov 0   ;;  %v2307_v61 = vunpack.i.h.bf16 %v3587_v48 }
 0x131   :  { %384 = vmatprep.subr.mxu0 %v2922_v55  ;;  %1611 = vrot.lane.b32.xlu1 %v1568_v42, %s2653_s23  ;;  %v2410_v32 = vpop.permute.xlu0 %2409  ;;  %v2623_v55 = vpack.i.bf16 %v3245_v36, %v3250_v52  ;;  %v582_v4 = vsel %vm569_vm9, %v2416_v35, %v2401_v5  ;;  %v2427_v56 = vunpack.i.h.bf16 %v3206_v17  ;;  %v2426_v9 = vunpack.i.l.bf16 %v3206_v17  ;;  %v3589_v17 = vld [vmem:[#allocation13_spill] sm:$0xff] }
 0x132   :  { %1929 = vmatprep.subr.mxu1 %v3568_v30  ;;  %v3279_v7 = vpop.permute.xlu1 %2439  ;;  %v2411_v29 = vunpack.i.l.bf16 %v2410_v32  ;;  %v2412_v54 = vunpack.i.h.bf16 %v2410_v32  ;;  %2643 = vset.pattern.permute.xlu0 %v2664_v37  ;;  %v2306_v32 = vunpack.i.l.bf16 %v3587_v48  ;;  %v2432_v43 = vunpack.i.h.bf16 %v3240_v39 }
 0x133   :  { %1930 = vmatpush3.msra.mxu1 %v2853_v21  ;;  %v2431_v63 = vunpack.i.l.bf16 %v3240_v39  ;;  %v821_v39 = vsel %vm815_vm10, %v2426_v9, %v2427_v56  ;;  %v2442_v5 = vunpack.i.h.bf16 %v3279_v7  ;;  %v2441_v53 = vunpack.i.l.bf16 %v3279_v7 }
 0x134   :  { %385 = vmatpush1.msra.mxu0 %v2862_v24  ;;  %2073 = vmatprep.subr.bf16.mxu1 %v3565_v38  ;;  %v2407_v24 = vunpack.i.h.bf16 %v3129_v58  ;;  %v587_v49 = vsel %vm569_vm9, %v2411_v29, %v2412_v54  ;;  %v584_v58 = vsel %vm569_vm9, %v2402_v40, %v2406_v26  ;;  %v1805_v40 = vld [vmem:[%s3534_s2] sm:$0x3f] }
 0x135   :  { %2624 = vrot.lane.b32.xlu0 %v2623_v55, %s2653_s23  ;;  %1932 = vmatmul.mubr.msk.f32.vlgmr.msra.gmra.mrb[2].mxu1 %vm224_vm8, %v14_v1  ;;  %v3297_v21 = vpop.permute.xlu0 %563  ;;  %v2080_v42 = vpack.c.bf16 %v587_v49, %v584_v58  ;;  %v590_v55 = vsel %vm569_vm9, %v3183_v3, %v3589_v17  ;;  %v816_v44 = vsel %vm815_vm10, %v2431_v63, %v2306_v32 }
 0x136   :  { %2062 = vmatprep.subr.bf16.mxu0 %v2061_v34  ;;  %2075 = vmatpush3.bf16.msra.mxu1 %v2074_v23  ;;  %v3303_v18 = vpop.permute.xlu1 %2449  ;;  %v586_v8 = vsel %vm569_vm9, %v2407_v24, %v2411_v29  ;;  %v585_v13 = vsel %vm569_vm9, %v2417_v50, %v2407_v24 }
 0x137   :  { %1832 = vmatmul.mubr.msk.f32.vlgmr.msra.gmra.mrb[0].mxu0 %vm224_vm8, %v14_v1  ;;  %2076 = vmatprep.subr.bf16.mxu1 %v3565_v38  ;;  %v2069_v57 = vpack.c.bf16 %v586_v8, %v583_v41  ;;  %v2071_v46 = vpack.c.bf16 %v585_v13, %v582_v4  ;;  %v589_v1 = vsel %vm569_vm9, %v3297_v21, %v3183_v3 }
 0x138   :  { %2064 = vmatpush1.bf16.msra.mxu0 %v2063_v19  ;;  %1948 = vmatprep.mubr.msk.f32.mxu1 %vm2661_vm6, %v3568_v30  ;;  %v817_v3 = vsel %vm815_vm10, %v2306_v32, %v2307_v61 }
 0x139   :  { %2066 = vmatprep.subr.bf16.mxu0 %v2065_v51  ;;  %2634 = vrot.lane.b32.xlu0 %v2633_v20, %s2653_s23  ;;  %v2420_v45 = vpop.permute.xlu0 %2419  ;;  %v1825_v20 = vld [vmem:[%s3533_s1 + $0x10] sm:$0x3f] }
 0x13a   :  { %2078 = vmatpush3.bf16.msra.mxu1 %v2077_v12  ;;  %v3319_v47 = vpop.permute.xlu1 %2459  ;;  %679 = vmatprep.mubr.f32.mxu0 %v3568_v30  ;;  %v2421_v31 = vunpack.i.l.bf16 %v2420_v45  ;;  %v2422_v14 = vunpack.i.h.bf16 %v2420_v45 }
 0x13b   :  { %2079 = vmatprep.subr.bf16.mxu1 %v3565_v38  ;;  %v2462_v37 = vunpack.i.h.bf16 %v3319_v47 }
 0x13c   :  { %2068 = vmatpush1.bf16.msra.mxu0 %v2067_v16  ;;  %v818_v15 = vsel %vm815_vm10, %v2307_v61, %v2421_v31  ;;  %v820_v2 = vsel %vm815_vm10, %v2422_v14, %v2426_v9  ;;  %v819_v19 = vsel %vm815_vm10, %v2432_v43, %v2422_v14 }
 0x13d   :  { %2070 = vmatprep.subr.bf16.mxu0 %v2069_v57  ;;  %1613 = vrot.lane.b32.xlu0 %v3588_v6, %s2653_s23  ;;  %v562_v11 = vpop.permute.xlu0 %561  ;;  %v2095_v29 = vpack.c.bf16 %v821_v39, %v818_v15  ;;  %v2082_v28 = vpack.c.bf16 %v820_v2, %v817_v3  ;;  %v2084_v27 = vpack.c.bf16 %v819_v19, %v816_v44 }
 0x13e   :  { %2081 = vmatpush3.bf16.msra.mxu1 %v2080_v42  ;;  %v3332_v62 = vpop.permute.xlu1 %2469  ;;  %v588_v22 = vsel %vm569_vm9, %v562_v11, %v3297_v21  ;;  %v2451_v21 = vunpack.i.l.bf16 %v3303_v18  ;;  %v2461_v42 = vunpack.i.l.bf16 %v3319_v47 }
 0x13f   :  { %1946 = vmatprep.subr.mxu1 %v3568_v30  ;;  %v2472_v4 = vunpack.i.h.bf16 %v3332_v62  ;;  %v2471_v31 = vunpack.i.l.bf16 %v3332_v62 }
 0x140   :  { %2072 = vmatpush1.bf16.msra.mxu0 %v2071_v46 }
 0x141   :  { %627 = vmatprep.subr.mxu0 %v589_v1  ;;  %1617 = vrot.lane.b32.xlu0 %v3027_v60, %s2653_s23  ;;  %v2435_v23 = vpop.permute.xlu0 %2434  ;;  %v2452_v60 = vunpack.i.h.bf16 %v3303_v18  ;;  %v831_v32 = vsel %vm815_vm10, %v2472_v4, %v2462_v37 }
 0x142   :  { %1947 = vmatpush3.msra.mxu1 %v590_v55  ;;  %v3355_v34 = vpop.permute.xlu1 %811  ;;  %v2436_v10 = vunpack.i.l.bf16 %v2435_v23  ;;  %v2437_v54 = vunpack.i.h.bf16 %v2435_v23  ;;  %v1826_v55 = vld [vmem:[%s3533_s1 + $0x18] sm:$0x3f] }
 0x143   :  { %2094 = vmatprep.subr.bf16.mxu1 %v3565_v38  ;;  %1949 = vmatmul.mubr.msk.f32.vlgmr.msra.gmra.mrb[4].mxu1 %vm224_vm8, %v1825_v20  ;;  %v825_v26 = vsel %vm815_vm10, %v2452_v60, %v2442_v5 }
 0x144   :  { %628 = vmatpush1.msra.mxu0 %v588_v22  ;;  %2096 = vmatpush3.bf16.msra.mxu1 %v2095_v29  ;;  %v822_v18 = vsel %vm815_vm10, %v2451_v21, %v2436_v10  ;;  %v824_v59 = vsel %vm815_vm10, %v2437_v54, %v2441_v53  ;;  %v823_v7 = vsel %vm815_vm10, %v2436_v10, %v2437_v54 }
 0x145   :  { %2083 = vmatprep.subr.bf16.mxu0 %v2082_v28  ;;  %1834 = vmatmul.mubr.msk.f32.vlgmr.msra.gmra.mrb[0].mxu0 %vm224_vm8, %v1825_v20  ;;  %v2445_v24 = vpop.permute.xlu0 %2444  ;;  %v2088_v45 = vpack.c.bf16 %v825_v26, %v822_v18 }
 0x146   :  { %2085 = vmatpush1.bf16.msra.mxu0 %v2084_v27  ;;  %v2447_v25 = vunpack.i.h.bf16 %v2445_v24  ;;  %v2446_v33 = vunpack.i.l.bf16 %v2445_v24  ;;  %v3368_v51 = vpop.permute.xlu1 %2474  ;;  %2097 = vmatprep.subr.bf16.mxu1 %v3565_v38 }
 0x147   :  { %1965 = vmatprep.mubr.msk.f32.mxu1 %vm2661_vm6, %v3568_v30  ;;  %925 = vmatprep.mubr.f32.mxu0 %v3568_v30  ;;  %v2477_v2 = vunpack.i.h.bf16 %v3368_v51  ;;  %v2476_v22 = vunpack.i.l.bf16 %v3368_v51 }
 0x148   :  { %v827_v12 = vsel %vm815_vm10, %v2446_v33, %v2447_v25  ;;  %v826_v8 = vsel %vm815_vm10, %v2442_v5, %v2446_v33  ;;  %1808 = vperm.xlu0 %2643, %v1805_v40  }
 0x149   :  { %v2098_v50 = vpack.c.bf16 %v827_v12, %v824_v59  ;;  %v2455_v35 = vpop.permute.xlu0 %2454  ;;  %v2086_v49 = vpack.c.bf16 %v826_v8, %v823_v7  ;;  %v1063_v28 = vsel %vm1061_vm11, %v2476_v22, %v2477_v2 }
 0x14a   :  { %v2485_v16 = vpop.permute.xlu1 %2484  ;;  %v2456_v41 = vunpack.i.l.bf16 %v2455_v35  ;;  %v2457_v58 = vunpack.i.h.bf16 %v2455_v35 }
 0x14b   :  { %2087 = vmatprep.subr.bf16.mxu0 %v2086_v49  ;;  %2099 = vmatpush3.bf16.msra.mxu1 %v2098_v50  ;;  %v2487_v39 = vunpack.i.h.bf16 %v2485_v16  ;;  %v2486_v19 = vunpack.i.l.bf16 %v2485_v16 }
 0x14c   :  { %2089 = vmatpush1.bf16.msra.mxu0 %v2088_v45  ;;  %2100 = vmatprep.subr.bf16.mxu1 %v3565_v38  ;;  %v828_v13 = vsel %vm815_vm10, %v2471_v31, %v2456_v41  ;;  %v830_v56 = vsel %vm815_vm10, %v2457_v58, %v2461_v42  ;;  %v829_v6 = vsel %vm815_vm10, %v2456_v41, %v2457_v58 }
 0x14d   :  { %v2465_v57 = vpop.permute.xlu0 %2464  ;;  %v2092_v63 = vpack.c.bf16 %v831_v32, %v828_v13  ;;  %v1067_v27 = vsel %vm1061_vm11, %v2486_v19, %v2487_v39 }
 0x14e   :  { %v2467_v14 = vunpack.i.h.bf16 %v2465_v57  ;;  %v2466_v48 = vunpack.i.l.bf16 %v2465_v57  ;;  %v2490_v61 = vpop.permute.xlu1 %2489 }
 0x14f   :  { %v2492_v29 = vunpack.i.h.bf16 %v2490_v61  ;;  %v2491_v3 = vunpack.i.l.bf16 %v2490_v61 }
 0x150   :  { %v833_v9 = vsel %vm815_vm10, %v2466_v48, %v2467_v14  ;;  %v832_v11 = vsel %vm815_vm10, %v2462_v37, %v2466_v48 }
 0x151   :  { %v2101_v46 = vpack.c.bf16 %v833_v9, %v830_v56  ;;  %v810_v62 = vpop.permute.xlu0 %809  ;;  %v2090_v43 = vpack.c.bf16 %v832_v11, %v829_v6  ;;  %v1062_v53 = vsel %vm1061_vm11, %v2491_v3, %v2476_v22 }
 0x152   :  { %v3391_v47 = vpop.permute.xlu1 %2499  ;;  %v835_v15 = vsel %vm815_vm10, %v810_v62, %v3355_v34 }
 0x153   :  { %2091 = vmatprep.subr.bf16.mxu0 %v2090_v43  ;;  %2102 = vmatpush3.bf16.msra.mxu1 %v2101_v46  ;;  %v2502_v35 = vunpack.i.h.bf16 %v3391_v47  ;;  %v2501_v49 = vunpack.i.l.bf16 %v3391_v47 }
 0x154   :  { %2093 = vmatpush1.bf16.msra.mxu0 %v2092_v63  ;;  %1963 = vmatprep.subr.mxu1 %v3568_v30 }
 0x155   :  { %v814_v17 = vpop.permute.xlu0 %813  ;;  %873 = vmatprep.subr.mxu0 %v835_v15 }
 0x156   :  { %v836_v1 = vsel %vm815_vm10, %v3355_v34, %v814_v17  ;;  %v2510_v20 = vpop.permute.xlu1 %2509 }
 0x157   :  { %1964 = vmatpush3.msra.mxu1 %v836_v1  ;;  %v2512_v8 = vunpack.i.h.bf16 %v2510_v20  ;;  %v2511_v26 = vunpack.i.l.bf16 %v2510_v20 }
 0x158   :  { %2115 = vmatprep.subr.bf16.mxu1 %v3565_v38  ;;  %1966 = vmatmul.mubr.msk.f32.vlgmr.msra.gmra.mrb[6].mxu1 %vm224_vm8, %v1826_v55 }
 0x159   :  { %v2480_v23 = vpop.permute.xlu0 %2479  ;;  %1982 = vmatprep.mubr.msk.f32.mxu1 %vm2661_vm6, %v3568_v30  ;;  %v1071_v42 = vsel %vm1061_vm11, %v2512_v8, %v2502_v35 }
 0x15a   :  { %v2482_v34 = vunpack.i.h.bf16 %v2480_v23  ;;  %v2481_v44 = vunpack.i.l.bf16 %v2480_v23  ;;  %v3407_v10 = vpop.permute.xlu1 %2519 }
 0x15b   :  { %v2521_v43 = vunpack.i.l.bf16 %v3407_v10 }
 0x15c   :  { %v1065_v54 = vsel %vm1061_vm11, %v2492_v29, %v2482_v34  ;;  %v1064_v60 = vsel %vm1061_vm11, %v2477_v2, %v2481_v44  ;;  %v1066_v21 = vsel %vm1061_vm11, %v2482_v34, %v2486_v19 }
 0x15d   :  { %v2116_v24 = vpack.c.bf16 %v1067_v27, %v1064_v60  ;;  %v808_v40 = vpop.permute.xlu0 %807  ;;  %v2103_v5 = vpack.c.bf16 %v1066_v21, %v1063_v28  ;;  %v2105_v51 = vpack.c.bf16 %v1065_v54, %v1062_v53 }
 0x15e   :  { %v834_v25 = vsel %vm815_vm10, %v808_v40, %v810_v62  ;;  %v2530_v33 = vpop.permute.xlu1 %2529  ;;  %v2522_v62 = vunpack.i.h.bf16 %v3407_v10  ;;  %v1827_v10 = vld [vmem:[%s3533_s1 + $0x20] sm:$0x3f] }
 0x15f   :  { %874 = vmatpush1.msra.mxu0 %v834_v25  ;;  %2117 = vmatpush3.bf16.msra.mxu1 %v2116_v24  ;;  %v2532_v11 = vunpack.i.h.bf16 %v2530_v33  ;;  %v2531_v32 = vunpack.i.l.bf16 %v2530_v33 }
 0x160   :  { %2104 = vmatprep.subr.bf16.mxu0 %v2103_v5  ;;  %1836 = vmatmul.mubr.msk.f32.vlgmr.msra.gmra.mrb[0].mxu0 %vm224_vm8, %v1826_v55 }
 0x161   :  { %v2495_v18 = vpop.permute.xlu0 %2494  ;;  %2106 = vmatpush1.bf16.msra.mxu0 %v2105_v51  ;;  %2118 = vmatprep.subr.bf16.mxu1 %v3565_v38  ;;  %v1077_v39 = vsel %vm1061_vm11, %v2532_v11, %v2522_v62 }
 0x162   :  { %v1058_v59 = vpop.permute.xlu1 %1057  ;;  %1171 = vmatprep.mubr.f32.mxu0 %v3568_v30  ;;  %v2496_v12 = vunpack.i.l.bf16 %v2495_v18  ;;  %v2497_v7 = vunpack.i.h.bf16 %v2495_v18 }
 0x164   :  { %v1068_v58 = vsel %vm1061_vm11, %v2511_v26, %v2496_v12  ;;  %v1070_v4 = vsel %vm1061_vm11, %v2497_v7, %v2501_v49  ;;  %v1069_v57 = vsel %vm1061_vm11, %v2496_v12, %v2497_v7 }
 0x165   :  { %v2505_v50 = vpop.permute.xlu0 %2504  ;;  %v2109_v13 = vpack.c.bf16 %v1071_v42, %v1068_v58 }
 0x166   :  { %v2507_v45 = vunpack.i.h.bf16 %v2505_v50  ;;  %v2506_v16 = vunpack.i.l.bf16 %v2505_v50  ;;  %v3421_v41 = vpop.permute.xlu1 %2534 }
 0x167   :  { %v2537_v54 = vunpack.i.h.bf16 %v3421_v41  ;;  %v2536_v24 = vunpack.i.l.bf16 %v3421_v41 }
 0x168   :  { %v1073_v31 = vsel %vm1061_vm11, %v2506_v16, %v2507_v45  ;;  %v1072_v37 = vsel %vm1061_vm11, %v2502_v35, %v2506_v16 }
 0x169   :  { %v2119_v14 = vpack.c.bf16 %v1073_v31, %v1070_v4  ;;  %v2515_v48 = vpop.permute.xlu0 %2514  ;;  %v2107_v61 = vpack.c.bf16 %v1072_v37, %v1069_v57  ;;  %v1309_v18 = vsel %vm1307_vm12, %v2536_v24, %v2537_v54 }
 0x16a   :  { %v2545_v56 = vpop.permute.xlu1 %2544  ;;  %v2516_v9 = vunpack.i.l.bf16 %v2515_v48  ;;  %v2517_v6 = vunpack.i.h.bf16 %v2515_v48 }
 0x16b   :  { %2108 = vmatprep.subr.bf16.mxu0 %v2107_v61  ;;  %2120 = vmatpush3.bf16.msra.mxu1 %v2119_v14  ;;  %v2547_v60 = vunpack.i.h.bf16 %v2545_v56  ;;  %v2546_v21 = vunpack.i.l.bf16 %v2545_v56 }
 0x16c   :  { %2110 = vmatpush1.bf16.msra.mxu0 %v2109_v13  ;;  %2121 = vmatprep.subr.bf16.mxu1 %v3565_v38  ;;  %v1074_v17 = vsel %vm1061_vm11, %v2531_v32, %v2516_v9  ;;  %v1076_v55 = vsel %vm1061_vm11, %v2517_v6, %v2521_v43  ;;  %v1075_v20 = vsel %vm1061_vm11, %v2516_v9, %v2517_v6 }
 0x16d   :  { %v2525_v46 = vpop.permute.xlu0 %2524  ;;  %v2113_v29 = vpack.c.bf16 %v1077_v39, %v1074_v17 }
 0x16e   :  { %v2527_v63 = vunpack.i.h.bf16 %v2525_v46  ;;  %v2526_v47 = vunpack.i.l.bf16 %v2525_v46  ;;  %v2550_v15 = vpop.permute.xlu1 %2549 }
 0x16f   :  { %v2552_v5 = vunpack.i.h.bf16 %v2550_v15  ;;  %v2551_v53 = vunpack.i.l.bf16 %v2550_v15 }
 0x170   :  { %v1079_v1 = vsel %vm1061_vm11, %v2526_v47, %v2527_v63  ;;  %v1078_v2 = vsel %vm1061_vm11, %v2522_v62, %v2526_v47 }
 0x171   :  { %v2122_v19 = vpack.c.bf16 %v1079_v1, %v1076_v55  ;;  %v1056_v22 = vpop.permute.xlu0 %1055  ;;  %v2111_v23 = vpack.c.bf16 %v1078_v2, %v1075_v20  ;;  %v1308_v49 = vsel %vm1307_vm12, %v2551_v53, %v2536_v24 }
 0x172   :  { %v3438_v3 = vpop.permute.xlu1 %2559  ;;  %v1081_v34 = vsel %vm1061_vm11, %v1056_v22, %v1058_v59 }
 0x173   :  { %2112 = vmatprep.subr.bf16.mxu0 %v2111_v23  ;;  %2123 = vmatpush3.bf16.msra.mxu1 %v2122_v19  ;;  %v2562_v48 = vunpack.i.h.bf16 %v3438_v3  ;;  %v2561_v61 = vunpack.i.l.bf16 %v3438_v3 }
 0x174   :  { %2114 = vmatpush1.bf16.msra.mxu0 %v2113_v29  ;;  %1980 = vmatprep.subr.mxu1 %v3568_v30 }
 0x175   :  { %v1060_v44 = vpop.permute.xlu0 %1059  ;;  %1119 = vmatprep.subr.mxu0 %v1081_v34 }
 0x176   :  { %v1082_v28 = vsel %vm1061_vm11, %v1058_v59, %v1060_v44  ;;  %v2570_v27 = vpop.permute.xlu1 %2569  ;;  %v1313_v59 = vsel %vm1307_vm12, %v2546_v21, %v2547_v60 }
 0x177   :  { %1981 = vmatpush3.msra.mxu1 %v1082_v28  ;;  %v2572_v37 = vunpack.i.h.bf16 %v2570_v27  ;;  %v2571_v42 = vunpack.i.l.bf16 %v2570_v27 }
 0x178   :  { %1983 = vmatmul.mubr.msk.f32.vlgmr.msra.gmra.mrb[8].mxu1 %vm224_vm8, %v1827_v10  ;;  %2136 = vmatprep.subr.bf16.mxu1 %v3565_v38 }
 0x179   :  { %v2540_v40 = vpop.permute.xlu0 %2539  ;;  %1999 = vmatprep.mubr.msk.f32.mxu1 %vm2661_vm6, %v3568_v30  ;;  %v1317_v62 = vsel %vm1307_vm12, %v2572_v37, %v2562_v48 }
 0x17a   :  { %v2542_v25 = vunpack.i.h.bf16 %v2540_v40  ;;  %v2541_v33 = vunpack.i.l.bf16 %v2540_v40  ;;  %v3452_v51 = vpop.permute.xlu1 %2579 }
 0x17b   :  { %v2582_v19 = vunpack.i.h.bf16 %v3452_v51 }
 0x17c   :  { %v1311_v12 = vsel %vm1307_vm12, %v2552_v5, %v2542_v25  ;;  %v1310_v7 = vsel %vm1307_vm12, %v2537_v54, %v2541_v33  ;;  %v1312_v8 = vsel %vm1307_vm12, %v2542_v25, %v2546_v21 }
 0x17d   :  { %v2137_v26 = vpack.c.bf16 %v1313_v59, %v1310_v7  ;;  %v1054_v50 = vpop.permute.xlu0 %1053  ;;  %v2124_v35 = vpack.c.bf16 %v1312_v8, %v1309_v18  ;;  %v2126_v41 = vpack.c.bf16 %v1311_v12, %v1308_v49  ;;  %v1828_v18 = vld [vmem:[%s3533_s1 + $0x28] sm:$0x3f] }
 0x17e   :  { %v1080_v45 = vsel %vm1061_vm11, %v1054_v50, %v1056_v22  ;;  %v2590_v16 = vpop.permute.xlu1 %2589  ;;  %v2581_v22 = vunpack.i.l.bf16 %v3452_v51 }
 0x17f   :  { %1120 = vmatpush1.msra.mxu0 %v1080_v45  ;;  %2138 = vmatpush3.bf16.msra.mxu1 %v2137_v26  ;;  %v2592_v20 = vunpack.i.h.bf16 %v2590_v16  ;;  %v2591_v2 = vunpack.i.l.bf16 %v2590_v16 }
 0x180   :  { %2125 = vmatprep.subr.bf16.mxu0 %v2124_v35  ;;  %1838 = vmatmul.mubr.msk.f32.vlgmr.msra.gmra.mrb[0].mxu0 %vm224_vm8, %v1827_v10 }
 0x181   :  { %v2555_v58 = vpop.permute.xlu0 %2554  ;;  %2127 = vmatpush1.bf16.msra.mxu0 %v2126_v41  ;;  %2139 = vmatprep.subr.bf16.mxu1 %v3565_v38  ;;  %v1323_v21 = vsel %vm1307_vm12, %v2592_v20, %v2582_v19 }
 0x182   :  { %1417 = vmatprep.mubr.f32.mxu0 %v3568_v30  ;;  %v2556_v4 = vunpack.i.l.bf16 %v2555_v58  ;;  %v2557_v31 = vunpack.i.h.bf16 %v2555_v58  ;;  %v1304_v57 = vpop.permute.xlu1 %1303 }
 0x184   :  { %v1314_v9 = vsel %vm1307_vm12, %v2571_v42, %v2556_v4  ;;  %v1316_v6 = vsel %vm1307_vm12, %v2557_v31, %v2561_v61  ;;  %v1315_v32 = vsel %vm1307_vm12, %v2556_v4, %v2557_v31 }
 0x185   :  { %v2565_v14 = vpop.permute.xlu0 %2564  ;;  %v2130_v15 = vpack.c.bf16 %v1317_v62, %v1314_v9 }
 0x186   :  { %v2567_v13 = vunpack.i.h.bf16 %v2565_v14  ;;  %v2566_v56 = vunpack.i.l.bf16 %v2565_v14  ;;  %v2595_v17 = vpop.permute.xlu1 %2594 }
 0x187   :  { %v2597_v3 = vunpack.i.h.bf16 %v2595_v17  ;;  %v2596_v34 = vunpack.i.l.bf16 %v2595_v17 }
 0x188   :  { %v1319_v11 = vsel %vm1307_vm12, %v2566_v56, %v2567_v13  ;;  %v1318_v46 = vsel %vm1307_vm12, %v2562_v48, %v2566_v56 }
 0x189   :  { %v2140_v43 = vpack.c.bf16 %v1319_v11, %v1316_v6  ;;  %v2575_v63 = vpop.permute.xlu0 %2574  ;;  %v2128_v47 = vpack.c.bf16 %v1318_v46, %v1315_v32  ;;  %v1620_v33 = vsel %vm88_vm3, %v2596_v34, %v2597_v3 }
 0x18a   :  { %v2576_v55 = vunpack.i.l.bf16 %v2575_v63  ;;  %v2577_v1 = vunpack.i.h.bf16 %v2575_v63  ;;  %v1300_v28 = vpop.permute.xlu1 %1299  ;;  %v2145_v8 = vpack.c.bf16 %v1620_v33, %v3250_v52 }
 0x18b   :  { %2129 = vmatprep.subr.bf16.mxu0 %v2128_v47  ;;  %2141 = vmatpush3.bf16.msra.mxu1 %v2140_v43 }
 0x18c   :  { %2131 = vmatpush1.bf16.msra.mxu0 %v2130_v15  ;;  %2142 = vmatprep.subr.bf16.mxu1 %v3565_v38  ;;  %v1320_v44 = vsel %vm1307_vm12, %v2591_v2, %v2576_v55  ;;  %v1322_v10 = vsel %vm1307_vm12, %v2577_v1, %v2581_v22  ;;  %v1321_v54 = vsel %vm1307_vm12, %v2576_v55, %v2577_v1 }
 0x18d   :  { %v2585_v39 = vpop.permute.xlu0 %2584  ;;  %v2134_v53 = vpack.c.bf16 %v1323_v21, %v1320_v44 }
 0x18e   :  { %v2587_v23 = vunpack.i.h.bf16 %v2585_v39  ;;  %v2586_v29 = vunpack.i.l.bf16 %v2585_v39  ;;  %v2610_v59 = vpop.permute.xlu1 %2609 }
 0x18f   :  { %v2612_v48 = vunpack.i.h.bf16 %v2610_v59  ;;  %v2611_v61 = vunpack.i.l.bf16 %v2610_v59 }
 0x190   :  { %v1325_v27 = vsel %vm1307_vm12, %v2586_v29, %v2587_v23  ;;  %v1324_v60 = vsel %vm1307_vm12, %v2582_v19, %v2586_v29 }
 0x191   :  { %v2143_v24 = vpack.c.bf16 %v1325_v27, %v1322_v10  ;;  %v1302_v40 = vpop.permute.xlu0 %1301  ;;  %v2132_v5 = vpack.c.bf16 %v1324_v60, %v1321_v54 }
 0x192   :  { %v1327_v25 = vsel %vm1307_vm12, %v1302_v40, %v1304_v57  ;;  %v1326_v7 = vsel %vm1307_vm12, %v1300_v28, %v1302_v40  ;;  %v2620_v49 = vpop.permute.xlu1 %2619  ;;  %v1829_v40 = vld [vmem:[%s3533_s1 + $0x30] sm:$0x3f] }
 0x193   :  { %2133 = vmatprep.subr.bf16.mxu0 %v2132_v5  ;;  %2144 = vmatpush3.bf16.msra.mxu1 %v2143_v24  ;;  %v2621_v37 = vunpack.i.l.bf16 %v2620_v49 }
 0x194   :  { %2135 = vmatpush1.bf16.msra.mxu0 %v2134_v53  ;;  %1997 = vmatprep.subr.mxu1 %v3568_v30 }
 0x195   :  { %v1306_v51 = vpop.permute.xlu0 %1305  ;;  %1365 = vmatprep.subr.mxu0 %v1327_v25 }
 0x196   :  { %v1328_v12 = vsel %vm1307_vm12, %v1304_v57, %v1306_v51  ;;  %v2622_v57 = vunpack.i.h.bf16 %v2620_v49  ;;  %v2630_v42 = vpop.permute.xlu1 %2629 }
 0x197   :  { %1998 = vmatpush3.msra.mxu1 %v1328_v12  ;;  %v2632_v2 = vunpack.i.h.bf16 %v2630_v42  ;;  %v2631_v39 = vunpack.i.l.bf16 %v2630_v42 }
 0x198   :  { %1366 = vmatpush1.msra.mxu0 %v1326_v7  ;;  %2000 = vmatmul.mubr.msk.f32.vlgmr.msra.gmra.mrb[10].mxu1 %vm224_vm8, %v1828_v18  ;;  %v1625_v32 = vsel %vm88_vm3, %v2622_v57, %v2612_v48 }
 0x199   :  { %2146 = vmatprep.subr.bf16.mxu0 %v2145_v8  ;;  %2157 = vmatprep.subr.bf16.mxu1 %v3565_v38 }
 0x19a   :  { %v2600_v26 = vpop.permute.xlu0 %2599  ;;  %1840 = vmatmul.mubr.msk.f32.vlgmr.msra.gmra.mrb[0].mxu0 %vm224_vm8, %v1828_v18  ;;  %2016 = vmatprep.mubr.msk.f32.mxu1 %vm2661_vm6, %v3568_v30 }
 0x19b   :  { %v2602_v50 = vunpack.i.h.bf16 %v2600_v26  ;;  %v2601_v35 = vunpack.i.l.bf16 %v2600_v26  ;;  %1725 = vmatprep.mubr.f32.mxu0 %v3568_v30  ;;  %v2640_v47 = vpop.permute.xlu1 %2639 }
 0x19c   :  { %v2642_v55 = vunpack.i.h.bf16 %v2640_v47  ;;  %v2641_v1 = vunpack.i.l.bf16 %v2640_v47 }
 0x19d   :  { %v1619_v45 = vsel %vm88_vm3, %v2602_v50, %v2596_v34  ;;  %v1621_v52 = vsel %vm88_vm3, %v2597_v3, %v2601_v35 }
 0x19e   :  { %v2147_v16 = vpack.c.bf16 %v1619_v45, %v3171_v0  ;;  %v2158_v41 = vpack.c.bf16 %v1621_v52, %v3245_v36  ;;  %v2605_v58 = vpop.permute.xlu0 %2604 }
 0x19f   :  { %v2606_v4 = vunpack.i.l.bf16 %v2605_v58  ;;  %v2607_v31 = vunpack.i.h.bf16 %v2605_v58  ;;  %v1616_v29 = vpop.permute.xlu1 %1615 }
 0x1a0   :  { %2148 = vmatpush1.bf16.msra.mxu0 %v2147_v16  ;;  %2159 = vmatpush3.bf16.msra.mxu1 %v2158_v41 }
 0x1a1   :  { %2160 = vmatprep.subr.bf16.mxu1 %v3565_v38  ;;  %v1622_v9 = vsel %vm88_vm3, %v2621_v37, %v2606_v4  ;;  %v1624_v0 = vsel %vm88_vm3, %v2607_v31, %v2611_v61  ;;  %v1623_v6 = vsel %vm88_vm3, %v2606_v4, %v2607_v31 }
 0x1a2   :  { %v2615_v14 = vpop.permute.xlu0 %2614  ;;  %v2151_v43 = vpack.c.bf16 %v1625_v32, %v1622_v9 }
 0x1a3   :  { %v2617_v13 = vunpack.i.h.bf16 %v2615_v14  ;;  %v2616_v56 = vunpack.i.l.bf16 %v2615_v14  ;;  %v1612_v5 = vpop.permute.xlu1 %1611 }
 0x1a5   :  { %v1627_v36 = vsel %vm88_vm3, %v2616_v56, %v2617_v13  ;;  %v1626_v11 = vsel %vm88_vm3, %v2612_v48, %v2616_v56 }
 0x1a6   :  { %v2161_v46 = vpack.c.bf16 %v1627_v36, %v1624_v0  ;;  %v2149_v62 = vpack.c.bf16 %v1626_v11, %v1623_v6 }
 0x1a7   :  { %v2625_v63 = vpop.permute.xlu0 %2624 }
 0x1a8   :  { %2150 = vmatprep.subr.bf16.mxu0 %v2149_v62  ;;  %2162 = vmatpush3.bf16.msra.mxu1 %v2161_v46  ;;  %v2626_v15 = vunpack.i.l.bf16 %v2625_v63  ;;  %v2627_v17 = vunpack.i.h.bf16 %v2625_v63 }
 0x1a9   :  { %2152 = vmatpush1.bf16.msra.mxu0 %v2151_v43  ;;  %2163 = vmatprep.subr.bf16.mxu1 %v3565_v38  ;;  %v1631_v38 = vsel %vm88_vm3, %v2642_v55, %v2632_v2 }
 0x1aa   :  { %v1628_v23 = vsel %vm88_vm3, %v2641_v1, %v2626_v15  ;;  %v1630_v3 = vsel %vm88_vm3, %v2627_v17, %v2631_v39  ;;  %v1629_v44 = vsel %vm88_vm3, %v2626_v15, %v2627_v17 }
 0x1ab   :  { %v2635_v20 = vpop.permute.xlu0 %2634  ;;  %v2155_v60 = vpack.c.bf16 %v1631_v38, %v1628_v23 }
 0x1ac   :  { %v2637_v19 = vunpack.i.h.bf16 %v2635_v20  ;;  %v2636_v22 = vunpack.i.l.bf16 %v2635_v20 }
 0x1ae   :  { %v1633_v34 = vsel %vm88_vm3, %v2636_v22, %v2637_v19  ;;  %v1632_v10 = vsel %vm88_vm3, %v2632_v2, %v2636_v22 }
 0x1af   :  { %v2164_v28 = vpack.c.bf16 %v1633_v34, %v1630_v3  ;;  %v1614_v27 = vpop.permute.xlu0 %1613  ;;  %v2153_v54 = vpack.c.bf16 %v1632_v10, %v1629_v44 }
 0x1b0   :  { %v1635_v21 = vsel %vm88_vm3, %v1614_v27, %v1616_v29  ;;  %v1634_v25 = vsel %vm88_vm3, %v1612_v5, %v1614_v27 }
 0x1b1   :  { %2154 = vmatprep.subr.bf16.mxu0 %v2153_v54  ;;  %2165 = vmatpush3.bf16.msra.mxu1 %v2164_v28 }
 0x1b2   :  { %2156 = vmatpush1.bf16.msra.mxu0 %v2155_v60  ;;  %2014 = vmatprep.subr.mxu1 %v3568_v30 }
 0x1b3   :  { %v1618_v24 = vpop.permute.xlu0 %1617  ;;  %1673 = vmatprep.subr.mxu0 %v1635_v21 }
 0x1b4   :  { %v1636_v53 = vsel %vm88_vm3, %v1616_v29, %v1618_v24 }
 0x1b5   :  { %2015 = vmatpush3.msra.mxu1 %v1636_v53 }
 0x1b6   :  { %1674 = vmatpush1.msra.mxu0 %v1634_v25  ;;  %2017 = vmatmul.mubr.msk.f32.vlgmr.msra.gmra.mrb[12].mxu1 %vm224_vm8, %v1829_v40 }
 0x1b7   :  { %1842 = vmatmul.mubr.msk.f32.vlgmr.msra.gmra.mrb[0].mxu0 %vm224_vm8, %v1829_v40 }
 0x1c7   :  { %v1809_v4 = vpop.permute.xlu0 %1808 }
 0x1f9   :  { %v365_v33 = vpop.f32.mrb[0].mxu1 }
 0x1fa   :  { %v1916_v51 = vpop.f32.mrb[1].mxu1 }
 0x208   :  { %v509_v30 = vpop.f32.mrb[2].mxu1 }
 0x209   :  { %v510_v18 = vadd.f32 %v509_v30, %v365_v33  ;;  %v1933_v59 = vpop.f32.mrb[3].mxu1 }
 0x216   :  { %v752_v12 = vpop.f32.mrb[4].mxu1 }
 0x217   :  { %v758_v7 = vadd.f32 %v752_v12, %v510_v18  ;;  %v1950_v8 = vpop.f32.mrb[5].mxu1 }
 0x22b   :  { %v998_v26 = vpop.f32.mrb[6].mxu1 }
 0x22c   :  { %v1004_v50 = vadd.f32 %v998_v26, %v758_v7  ;;  %v1967_v35 = vpop.f32.mrb[7].mxu1 }
 0x24b   :  { %v1244_v49 = vpop.f32.mrb[8].mxu1 }
 0x24c   :  { %v1250_v45 = vadd.f32 %v1244_v49, %v1004_v50  ;;  %v1984_v52 = vpop.f32.mrb[9].mxu1 }
 0x26b   :  { %v1490_v16 = vpop.f32.mrb[10].mxu1 }
 0x26c   :  { %v1496_v41 = vadd.f32 %v1490_v16, %v1250_v45  ;;  %v2001_v58 = vpop.f32.mrb[11].mxu1 }
 0x289   :  { %v1798_v31 = vpop.f32.mrb[12].mxu1 }
 0x28a   :  { %v1804_v57 = vadd.f32 %v1798_v31, %v1496_v41  ;;  %v1727_v37 = vpop.f32.mrb[0].mxu0  ;;  %v2018_v42 = vpop.f32.mrb[13].mxu1 }
 0x28b   :  { %v1811_v14 = vadd.f32 %v1809_v4, %v1727_v37  ;;  %v1729_v48 = vpop.f32.mrb[1].mxu0 }
 0x28c   :  { %v1813_v61 = vadd.f32 %v1809_v4, %v1804_v57  ;;  %v1812_v13 = vadd.f32 %v1809_v4, %v1729_v48 }
 0x28d   :  { %2644 = vtanh.f32 %v1811_v14 }
 0x28e   :  { %2646 = vtanh.f32 %v1813_v61 }
 0x28f   :  { %2648 = vtanh.f32 %v1812_v13 }
 0x297   :  { %v2645_v56 = vpop.eup %2644 }
 0x298   :  { %v2647_v9 = vpop.eup %2646  ;;  %1817 = vst [vmem:[%s3535_s3] sm:$0x3f] %v2645_v56 }
 0x299   :  { %v2649_v0 = vpop.eup %2648  ;;  %1819 = vst [vmem:[%s3535_s3 + $0x10] sm:$0x3f] %v2647_v9 }
 0x29a   :  { %1818 = vst [vmem:[%s3535_s3 + $0x8] sm:$0x3f] %v2649_v0 }

</bundles_post_ra>
